<compile_context>
chip_gen: v7x
topology: tpu7x:2x2x1
jax: 0.10.0
libtpu: 0.0.40
codegen_flags: <defaults>
</compile_context>

<pallas_src>
import functools

import jax
import jax.numpy as jnp
from jax.experimental import pallas as pl
from jax.experimental.pallas import tpu as pltpu


HID1, HID2, HID3 = 512, 256, 100     # hidden dims of the torch module
HID3_PAD = 128                        # pad the 100-wide hidden dim to 128 lanes


def _round_up(x, m):
    return (x + m - 1) // m * m


# --------------------------------------------------------------------------
# Kernel
# --------------------------------------------------------------------------
def _make_kernel(z_dim: int, training: bool):
    def kernel(*refs):
        f32 = jnp.float32
        bf16 = jnp.bfloat16

        if training:
            (x_ref, eps_ref,
             w1, b1, w2, b2, w3, b3, wml, bml,
             d1, db1, d2, db2, d3, db3, d4, db4,
             mlv_ref, recon_ref) = refs
        else:
            (x_ref,
             w1, b1, w2, b2, w3, b3, wml, bml,
             d1, db1, d2, db2, d3, db3, d4, db4,
             mlv_ref, recon_ref) = refs

        def dense_relu(a, w_ref, b_ref):
            # bf16 x bf16 MXU matmul, f32 accumulate; bias-add + ReLU in f32.
            h = jnp.dot(a, w_ref[...], preferred_element_type=f32) + b_ref[...]
            return jnp.maximum(h, 0.0).astype(bf16)

        # ---------------- VaeEncoder ----------------
        x = x_ref[...]                                  # [TB, in_dim] bf16
        h = dense_relu(x, w1, b1)                       # [TB, 512]
        h = dense_relu(h, w2, b2)                       # [TB, 256]
        h = dense_relu(h, w3, b3)                       # [TB, 128] (100 padded)

        # fused mean|logvar head: one matmul, one store
        mlv = jnp.dot(h, wml[...], preferred_element_type=f32) + bml[...]
        mlv_ref[...] = mlv                              # [TB, 2*z_dim] f32

        mean = mlv[:, :z_dim]
        logvar = mlv[:, z_dim:]

        # ---------------- reparameterization ----------------
        if training:
            std = jnp.exp(0.5 * logvar)
            z = mean + std * eps_ref[...]
        else:
            z = mean
        z = z.astype(bf16)                              # [TB, z_dim]

        # ---------------- VaeDecoder ----------------
        g = dense_relu(z, d1, db1)                      # [TB, 128]
        g = dense_relu(g, d2, db2)                      # [TB, 256]
        g = dense_relu(g, d3, db3)                      # [TB, 512]
        logits = jnp.dot(g, d4[...], preferred_element_type=f32) + db4[...]
        recon_ref[...] = jax.nn.sigmoid(logits)         # [TB, in_dim] f32

    return kernel


# --------------------------------------------------------------------------
# Parameters: torch-like f32 init, then convert/pad/fuse for the kernel
# --------------------------------------------------------------------------
def init_params(key, image_size, num_concepts, dtype=jnp.float32):
    """Mimics nn.Linear shapes: [(w, b)] for enc fc1..3, mean, logvar, dec fc1..4."""
    in_dim = image_size * image_size
    z = num_concepts
    dims = [(in_dim, HID1), (HID1, HID2), (HID2, HID3),        # encoder FC
            (HID3, z), (HID3, z),                              # mean / logvar heads
            (z, HID3), (HID3, HID2), (HID2, HID1), (HID1, in_dim)]  # decoder
    params = []
    for fan_in, fan_out in dims:
        key, wk, bk = jax.random.split(key, 3)
        bound = 1.0 / float(fan_in) ** 0.5
        w = jax.random.uniform(wk, (fan_in, fan_out), dtype, -bound, bound)
        b = jax.random.uniform(bk, (1, fan_out), dtype, -bound, bound)
        params.append((w, b))
    return params


def pack_params(params, weight_dtype=jnp.bfloat16):
    """Zero-pad the 100-wide hidden dim to 128, fuse mean|logvar, cast weights bf16."""
    ((w1, b1), (w2, b2), (w3, b3), (wm, bm), (wlv, blv),
     (d1, db1), (d2, db2), (d3, db3), (d4, db4)) = params

    def pad_cols(a, n):
        return jnp.pad(a, ((0, 0), (0, n - a.shape[1])))

    def pad_rows(a, n):
        return jnp.pad(a, ((0, n - a.shape[0]), (0, 0)))

    # Padding with zeros is exact: ReLU(0)=0 and zero rows contribute nothing.
    w3p, b3p = pad_cols(w3, HID3_PAD), pad_cols(b3, HID3_PAD)
    wm_p, wlv_p = pad_rows(wm, HID3_PAD), pad_rows(wlv, HID3_PAD)
    d1p, db1p = pad_cols(d1, HID3_PAD), pad_cols(db1, HID3_PAD)
    d2p = pad_rows(d2, HID3_PAD)

    wml = jnp.concatenate([wm_p, wlv_p], axis=1)        # [128, 2*z]
    bml = jnp.concatenate([bm, blv], axis=1)            # [1, 2*z]

    ws = [w1, w2, w3p, wml, d1p, d2p, d3, d4]
    bs = [b1, b2, b3p, bml, db1p, db2, db3, db4]
    packed = []
    for w, b in zip(ws, bs):
        packed.append(w.astype(weight_dtype))           # bf16 weights (halve HBM DMA)
        packed.append(b.astype(jnp.float32))             # tiny biases stay f32
    return packed


# --------------------------------------------------------------------------
# Wrapper
# --------------------------------------------------------------------------
def vae_conceptizer_forward(x, packed_params, *, image_size, num_concepts,
                            training=True, rng_key=None, tile_b=128):
    """Mirrors VaeConceptizer.forward.

    Returns (concept_mean[B,z,1], concept_logvar[B,z,1], x_reconstruct like x).
    """
    in_dim = image_size * image_size
    z_dim = num_concepts
    B = x.shape[0]

    # Batch tile: multiple of 8 sublanes; cap (use 256 on v6e/v7x for full MXU rows).
    TB = min(_round_up(B, 8), tile_b)
    B_pad = _round_up(B, TB)

    x_flat = x.reshape(B, in_dim).astype(jnp.bfloat16)
    if B_pad != B:
        x_flat = jnp.pad(x_flat, ((0, B_pad - B), (0, 0)))

    inputs = [x_flat]
    batch_spec = lambda cols: pl.BlockSpec((TB, cols), lambda i: (i, 0))
    in_specs = [batch_spec(in_dim)]

    if training:
        if rng_key is None:
            rng_key = jax.random.PRNGKey(0)
        # TODO(synk): epsilon uses JAX RNG; torch.randn_like bit-stream is not
        # reproducible here, but the reparameterization math matches exactly.
        eps = jax.random.normal(rng_key, (B_pad, z_dim), jnp.float32)
        inputs.append(eps)
        in_specs.append(batch_spec(z_dim))

    # Weights/biases: full-shape blocks, constant index_map -> resident in VMEM.
    const_map = lambda i: (0, 0)
    for p in packed_params:
        inputs.append(p)
        in_specs.append(pl.BlockSpec(p.shape, const_map))

    out_shape = (
        jax.ShapeDtypeStruct((B_pad, 2 * z_dim), jnp.float32),   # fused mean|logvar
        jax.ShapeDtypeStruct((B_pad, in_dim), jnp.float32),       # reconstruction
    )
    out_specs = (batch_spec(2 * z_dim), batch_spec(in_dim))

    # Advisory cost estimate (memory-bound custom call).
    layer_dims = [(in_dim, HID1), (HID1, HID2), (HID2, HID3_PAD), (HID3_PAD, 2 * z_dim),
                  (z_dim, HID3_PAD), (HID3_PAD, HID2), (HID2, HID1), (HID1, in_dim)]
    flops = 2 * B_pad * sum(a * b for a, b in layer_dims)
    transcendentals = B_pad * (z_dim + in_dim)
    bytes_accessed = (
        sum(int(p.size) * p.dtype.itemsize for p in packed_params)
        + int(x_flat.size) * 2
        + (B_pad * z_dim * 4 if training else 0)
        + B_pad * (2 * z_dim + in_dim) * 4)

    mlv, recon_flat = pl.pallas_call(
        _make_kernel(z_dim, training),
        grid=(B_pad // TB,),
        in_specs=in_specs,
        out_specs=out_specs,
        out_shape=out_shape,
        compiler_params=pltpu.CompilerParams(
            dimension_semantics=("parallel",),          # megacore sharding on v7x
            vmem_limit_bytes=16 << 20),                  # working set ~2 MiB; leave headroom
        cost_estimate=pl.CostEstimate(
            flops=flops, transcendentals=transcendentals,
            bytes_accessed=bytes_accessed),
    )(*inputs)

    mean = mlv[:B, :z_dim][..., None]                    # match torch unsqueeze(-1)
    logvar = mlv[:B, z_dim:][..., None]
    recon = recon_flat[:B].reshape(x.shape).astype(x.dtype)
    return mean, logvar, recon


# --------------------------------------------------------------------------
# Main
# --------------------------------------------------------------------------
if __name__ == "__main__":
    image_size = 16          # -> in_dim = 256
    num_concepts = 8         # z_dim
    batch = 8

    key = jax.random.PRNGKey(0)
    k_x, k_p, k_eps = jax.random.split(key, 3)

    # NCHW input like the torch module would receive (e.g. MNIST-style [B,1,H,W])
    x = jax.random.normal(k_x, (batch, 1, image_size, image_size), jnp.float32)
    params = init_params(k_p, image_size, num_concepts)
    packed = pack_params(params)

    mean, logvar, recon = vae_conceptizer_forward(
        x, packed, image_size=image_size, num_concepts=num_concepts,
        training=True, rng_key=k_eps)

    jax.block_until_ready((mean, logvar, recon))

    assert mean.shape == (batch, num_concepts, 1)
    assert logvar.shape == (batch, num_concepts, 1)
    assert recon.shape == x.shape
    assert bool(jnp.all(jnp.isfinite(recon)))
    assert bool(jnp.all((recon >= 0.0) & (recon <= 1.0)))

    # also exercise the eval-mode variant (no eps input DMA'd)
    mean_e, logvar_e, recon_e = vae_conceptizer_forward(
        x, packed, image_size=image_size, num_concepts=num_concepts,
        training=False)
    jax.block_until_ready((mean_e, logvar_e, recon_e))
    assert recon_e.shape == x.shape

    print("KERNEL_OK")
</pallas_src>

<mosaic_0001>
module attributes {stable_mosaic.version = 11 : i64} {
  func.func @kernel(%arg0: i32, %arg1: memref<8x256xbf16, #tpu.memory_space<vmem>>, %arg2: memref<8x8xf32, #tpu.memory_space<vmem>>, %arg3: memref<256x512xbf16, #tpu.memory_space<vmem>>, %arg4: memref<1x512xf32, #tpu.memory_space<vmem>>, %arg5: memref<512x256xbf16, #tpu.memory_space<vmem>>, %arg6: memref<1x256xf32, #tpu.memory_space<vmem>>, %arg7: memref<256x128xbf16, #tpu.memory_space<vmem>>, %arg8: memref<1x128xf32, #tpu.memory_space<vmem>>, %arg9: memref<128x16xbf16, #tpu.memory_space<vmem>>, %arg10: memref<1x16xf32, #tpu.memory_space<vmem>>, %arg11: memref<8x128xbf16, #tpu.memory_space<vmem>>, %arg12: memref<1x128xf32, #tpu.memory_space<vmem>>, %arg13: memref<128x256xbf16, #tpu.memory_space<vmem>>, %arg14: memref<1x256xf32, #tpu.memory_space<vmem>>, %arg15: memref<256x512xbf16, #tpu.memory_space<vmem>>, %arg16: memref<1x512xf32, #tpu.memory_space<vmem>>, %arg17: memref<512x256xbf16, #tpu.memory_space<vmem>>, %arg18: memref<1x256xf32, #tpu.memory_space<vmem>>, %arg19: memref<8x16xf32, #tpu.memory_space<vmem>>, %arg20: memref<8x256xf32, #tpu.memory_space<vmem>>) attributes {dimension_semantics = [#tpu.dimension_semantics<parallel>], iteration_bounds = array<i64: 1>, scalar_prefetch = 0 : i64, scratch_operands = 0 : i64, tpu.core_type = #tpu.core_type<tc>, window_params = [{transform_indices = @transform_0, window_bounds = array<i64: 8, 256>}, {transform_indices = @transform_1, window_bounds = array<i64: 8, 8>}, {pipeline_mode = #tpu.pipeline_mode<synchronous>, transform_indices = @transform_2, window_bounds = array<i64: 256, 512>}, {pipeline_mode = #tpu.pipeline_mode<synchronous>, transform_indices = @transform_3, window_bounds = array<i64: 1, 512>}, {pipeline_mode = #tpu.pipeline_mode<synchronous>, transform_indices = @transform_4, window_bounds = array<i64: 512, 256>}, {pipeline_mode = #tpu.pipeline_mode<synchronous>, transform_indices = @transform_5, window_bounds = array<i64: 1, 256>}, {pipeline_mode = #tpu.pipeline_mode<synchronous>, transform_indices = @transform_6, window_bounds = array<i64: 256, 128>}, {pipeline_mode = #tpu.pipeline_mode<synchronous>, transform_indices = @transform_7, window_bounds = array<i64: 1, 128>}, {pipeline_mode = #tpu.pipeline_mode<synchronous>, transform_indices = @transform_8, window_bounds = array<i64: 128, 16>}, {pipeline_mode = #tpu.pipeline_mode<synchronous>, transform_indices = @transform_9, window_bounds = array<i64: 1, 16>}, {pipeline_mode = #tpu.pipeline_mode<synchronous>, transform_indices = @transform_10, window_bounds = array<i64: 8, 128>}, {pipeline_mode = #tpu.pipeline_mode<synchronous>, transform_indices = @transform_11, window_bounds = array<i64: 1, 128>}, {pipeline_mode = #tpu.pipeline_mode<synchronous>, transform_indices = @transform_12, window_bounds = array<i64: 128, 256>}, {pipeline_mode = #tpu.pipeline_mode<synchronous>, transform_indices = @transform_13, window_bounds = array<i64: 1, 256>}, {pipeline_mode = #tpu.pipeline_mode<synchronous>, transform_indices = @transform_14, window_bounds = array<i64: 256, 512>}, {pipeline_mode = #tpu.pipeline_mode<synchronous>, transform_indices = @transform_15, window_bounds = array<i64: 1, 512>}, {pipeline_mode = #tpu.pipeline_mode<synchronous>, transform_indices = @transform_16, window_bounds = array<i64: 512, 256>}, {pipeline_mode = #tpu.pipeline_mode<synchronous>, transform_indices = @transform_17, window_bounds = array<i64: 1, 256>}, {transform_indices = @transform_18, window_bounds = array<i64: 8, 16>}, {transform_indices = @transform_19, window_bounds = array<i64: 8, 256>}]} {
    %c0 = arith.constant 0 : index
    %c0_0 = arith.constant 0 : index
    %0 = vector.load %arg1[%c0, %c0_0] : memref<8x256xbf16, #tpu.memory_space<vmem>>, vector<8x256xbf16>
    %c0_1 = arith.constant 0 : index
    %c0_2 = arith.constant 0 : index
    %1 = vector.load %arg3[%c0_1, %c0_2] : memref<256x512xbf16, #tpu.memory_space<vmem>>, vector<256x512xbf16>
    %cst = arith.constant dense<0.000000e+00> : vector<8x512xf32>
    %2 = tpu.matmul %0, %1, %cst {dimension_numbers = #tpu.dot_dimension_numbers<[1], [0], [0], [1], [0, 0, 1, 1], [], []>} : vector<8x256xbf16>, vector<256x512xbf16>, vector<8x512xf32> -> vector<8x512xf32>
    %c0_3 = arith.constant 0 : index
    %c0_4 = arith.constant 0 : index
    %3 = vector.load %arg4[%c0_3, %c0_4] : memref<1x512xf32, #tpu.memory_space<vmem>>, vector<1x512xf32>
    %4 = vector.broadcast %3 : vector<1x512xf32> to vector<8x512xf32>
    %5 = arith.addf %2, %4 : vector<8x512xf32>
    %cst_5 = arith.constant 0.000000e+00 : f32
    %6 = vector.broadcast %cst_5 : f32 to vector<8x512xf32>
    %7 = arith.maximumf %5, %6 : vector<8x512xf32>
    %8 = arith.truncf %7 : vector<8x512xf32> to vector<8x512xbf16>
    %c0_6 = arith.constant 0 : index
    %c0_7 = arith.constant 0 : index
    %9 = vector.load %arg5[%c0_6, %c0_7] : memref<512x256xbf16, #tpu.memory_space<vmem>>, vector<512x256xbf16>
    %cst_8 = arith.constant dense<0.000000e+00> : vector<8x256xf32>
    %10 = tpu.matmul %8, %9, %cst_8 {dimension_numbers = #tpu.dot_dimension_numbers<[1], [0], [0], [1], [0, 0, 1, 1], [], []>} : vector<8x512xbf16>, vector<512x256xbf16>, vector<8x256xf32> -> vector<8x256xf32>
    %c0_9 = arith.constant 0 : index
    %c0_10 = arith.constant 0 : index
    %11 = vector.load %arg6[%c0_9, %c0_10] : memref<1x256xf32, #tpu.memory_space<vmem>>, vector<1x256xf32>
    %12 = vector.broadcast %11 : vector<1x256xf32> to vector<8x256xf32>
    %13 = arith.addf %10, %12 : vector<8x256xf32>
    %cst_11 = arith.constant 0.000000e+00 : f32
    %14 = vector.broadcast %cst_11 : f32 to vector<8x256xf32>
    %15 = arith.maximumf %13, %14 : vector<8x256xf32>
    %16 = arith.truncf %15 : vector<8x256xf32> to vector<8x256xbf16>
    %c0_12 = arith.constant 0 : index
    %c0_13 = arith.constant 0 : index
    %17 = vector.load %arg7[%c0_12, %c0_13] : memref<256x128xbf16, #tpu.memory_space<vmem>>, vector<256x128xbf16>
    %cst_14 = arith.constant dense<0.000000e+00> : vector<8x128xf32>
    %18 = tpu.matmul %16, %17, %cst_14 {dimension_numbers = #tpu.dot_dimension_numbers<[1], [0], [0], [1], [0, 0, 1, 1], [], []>} : vector<8x256xbf16>, vector<256x128xbf16>, vector<8x128xf32> -> vector<8x128xf32>
    %c0_15 = arith.constant 0 : index
    %c0_16 = arith.constant 0 : index
    %19 = vector.load %arg8[%c0_15, %c0_16] : memref<1x128xf32, #tpu.memory_space<vmem>>, vector<1x128xf32>
    %20 = vector.broadcast %19 : vector<1x128xf32> to vector<8x128xf32>
    %21 = arith.addf %18, %20 : vector<8x128xf32>
    %cst_17 = arith.constant 0.000000e+00 : f32
    %22 = vector.broadcast %cst_17 : f32 to vector<8x128xf32>
    %23 = arith.maximumf %21, %22 : vector<8x128xf32>
    %24 = arith.truncf %23 : vector<8x128xf32> to vector<8x128xbf16>
    %c0_18 = arith.constant 0 : index
    %c0_19 = arith.constant 0 : index
    %25 = vector.load %arg9[%c0_18, %c0_19] : memref<128x16xbf16, #tpu.memory_space<vmem>>, vector<128x16xbf16>
    %cst_20 = arith.constant dense<0.000000e+00> : vector<8x16xf32>
    %26 = tpu.matmul %24, %25, %cst_20 {dimension_numbers = #tpu.dot_dimension_numbers<[1], [0], [0], [1], [0, 0, 1, 1], [], []>} : vector<8x128xbf16>, vector<128x16xbf16>, vector<8x16xf32> -> vector<8x16xf32>
    %c0_21 = arith.constant 0 : index
    %c0_22 = arith.constant 0 : index
    %27 = vector.load %arg10[%c0_21, %c0_22] : memref<1x16xf32, #tpu.memory_space<vmem>>, vector<1x16xf32>
    %28 = vector.broadcast %27 : vector<1x16xf32> to vector<8x16xf32>
    %29 = arith.addf %26, %28 : vector<8x16xf32>
    %c0_23 = arith.constant 0 : index
    %c0_24 = arith.constant 0 : index
    %30 = vector.load %arg19[%c0_23, %c0_24] : memref<8x16xf32, #tpu.memory_space<vmem>>, vector<8x16xf32>
    tpu.vector_store %arg19[%c0_23, %c0_24], %29 {strides = array<i32>} : memref<8x16xf32, #tpu.memory_space<vmem>>, vector<8x16xf32>,
    %31 = vector.extract_strided_slice %29 {offsets = [0, 0], sizes = [8, 8], strides = [1, 1]} : vector<8x16xf32> to vector<8x8xf32>
    %32 = vector.extract_strided_slice %29 {offsets = [0, 8], sizes = [8, 8], strides = [1, 1]} : vector<8x16xf32> to vector<8x8xf32>
    %cst_25 = arith.constant 5.000000e-01 : f32
    %33 = vector.broadcast %cst_25 : f32 to vector<8x8xf32>
    %34 = arith.mulf %33, %32 : vector<8x8xf32>
    %35 = math.exp %34 : vector<8x8xf32>
    %c0_26 = arith.constant 0 : index
    %c0_27 = arith.constant 0 : index
    %36 = vector.load %arg2[%c0_26, %c0_27] : memref<8x8xf32, #tpu.memory_space<vmem>>, vector<8x8xf32>
    %37 = arith.mulf %35, %36 : vector<8x8xf32>
    %38 = arith.addf %31, %37 : vector<8x8xf32>
    %39 = arith.truncf %38 : vector<8x8xf32> to vector<8x8xbf16>
    %c0_28 = arith.constant 0 : index
    %c0_29 = arith.constant 0 : index
    %40 = vector.load %arg11[%c0_28, %c0_29] : memref<8x128xbf16, #tpu.memory_space<vmem>>, vector<8x128xbf16>
    %cst_30 = arith.constant dense<0.000000e+00> : vector<8x128xf32>
    %41 = tpu.matmul %39, %40, %cst_30 {dimension_numbers = #tpu.dot_dimension_numbers<[1], [0], [0], [1], [0, 0, 1, 1], [], []>} : vector<8x8xbf16>, vector<8x128xbf16>, vector<8x128xf32> -> vector<8x128xf32>
    %c0_31 = arith.constant 0 : index
    %c0_32 = arith.constant 0 : index
    %42 = vector.load %arg12[%c0_31, %c0_32] : memref<1x128xf32, #tpu.memory_space<vmem>>, vector<1x128xf32>
    %43 = vector.broadcast %42 : vector<1x128xf32> to vector<8x128xf32>
    %44 = arith.addf %41, %43 : vector<8x128xf32>
    %cst_33 = arith.constant 0.000000e+00 : f32
    %45 = vector.broadcast %cst_33 : f32 to vector<8x128xf32>
    %46 = arith.maximumf %44, %45 : vector<8x128xf32>
    %47 = arith.truncf %46 : vector<8x128xf32> to vector<8x128xbf16>
    %c0_34 = arith.constant 0 : index
    %c0_35 = arith.constant 0 : index
    %48 = vector.load %arg13[%c0_34, %c0_35] : memref<128x256xbf16, #tpu.memory_space<vmem>>, vector<128x256xbf16>
    %cst_36 = arith.constant dense<0.000000e+00> : vector<8x256xf32>
    %49 = tpu.matmul %47, %48, %cst_36 {dimension_numbers = #tpu.dot_dimension_numbers<[1], [0], [0], [1], [0, 0, 1, 1], [], []>} : vector<8x128xbf16>, vector<128x256xbf16>, vector<8x256xf32> -> vector<8x256xf32>
    %c0_37 = arith.constant 0 : index
    %c0_38 = arith.constant 0 : index
    %50 = vector.load %arg14[%c0_37, %c0_38] : memref<1x256xf32, #tpu.memory_space<vmem>>, vector<1x256xf32>
    %51 = vector.broadcast %50 : vector<1x256xf32> to vector<8x256xf32>
    %52 = arith.addf %49, %51 : vector<8x256xf32>
    %cst_39 = arith.constant 0.000000e+00 : f32
    %53 = vector.broadcast %cst_39 : f32 to vector<8x256xf32>
    %54 = arith.maximumf %52, %53 : vector<8x256xf32>
    %55 = arith.truncf %54 : vector<8x256xf32> to vector<8x256xbf16>
    %c0_40 = arith.constant 0 : index
    %c0_41 = arith.constant 0 : index
    %56 = vector.load %arg15[%c0_40, %c0_41] : memref<256x512xbf16, #tpu.memory_space<vmem>>, vector<256x512xbf16>
    %cst_42 = arith.constant dense<0.000000e+00> : vector<8x512xf32>
    %57 = tpu.matmul %55, %56, %cst_42 {dimension_numbers = #tpu.dot_dimension_numbers<[1], [0], [0], [1], [0, 0, 1, 1], [], []>} : vector<8x256xbf16>, vector<256x512xbf16>, vector<8x512xf32> -> vector<8x512xf32>
    %c0_43 = arith.constant 0 : index
    %c0_44 = arith.constant 0 : index
    %58 = vector.load %arg16[%c0_43, %c0_44] : memref<1x512xf32, #tpu.memory_space<vmem>>, vector<1x512xf32>
    %59 = vector.broadcast %58 : vector<1x512xf32> to vector<8x512xf32>
    %60 = arith.addf %57, %59 : vector<8x512xf32>
    %cst_45 = arith.constant 0.000000e+00 : f32
    %61 = vector.broadcast %cst_45 : f32 to vector<8x512xf32>
    %62 = arith.maximumf %60, %61 : vector<8x512xf32>
    %63 = arith.truncf %62 : vector<8x512xf32> to vector<8x512xbf16>
    %c0_46 = arith.constant 0 : index
    %c0_47 = arith.constant 0 : index
    %64 = vector.load %arg17[%c0_46, %c0_47] : memref<512x256xbf16, #tpu.memory_space<vmem>>, vector<512x256xbf16>
    %cst_48 = arith.constant dense<0.000000e+00> : vector<8x256xf32>
    %65 = tpu.matmul %63, %64, %cst_48 {dimension_numbers = #tpu.dot_dimension_numbers<[1], [0], [0], [1], [0, 0, 1, 1], [], []>} : vector<8x512xbf16>, vector<512x256xbf16>, vector<8x256xf32> -> vector<8x256xf32>
    %c0_49 = arith.constant 0 : index
    %c0_50 = arith.constant 0 : index
    %66 = vector.load %arg18[%c0_49, %c0_50] : memref<1x256xf32, #tpu.memory_space<vmem>>, vector<1x256xf32>
    %67 = vector.broadcast %66 : vector<1x256xf32> to vector<8x256xf32>
    %68 = arith.addf %65, %67 : vector<8x256xf32>
    %69 = arith.negf %68 : vector<8x256xf32>
    %70 = math.exp %69 : vector<8x256xf32>
    %cst_51 = arith.constant 1.000000e+00 : f32
    %71 = vector.broadcast %cst_51 : f32 to vector<8x256xf32>
    %72 = arith.addf %71, %70 : vector<8x256xf32>
    %73 = arith.divf %71, %72 : vector<8x256xf32>
    %c0_52 = arith.constant 0 : index
    %c0_53 = arith.constant 0 : index
    %74 = vector.load %arg20[%c0_52, %c0_53] : memref<8x256xf32, #tpu.memory_space<vmem>>, vector<8x256xf32>
    tpu.vector_store %arg20[%c0_52, %c0_53], %73 {strides = array<i32>} : memref<8x256xf32, #tpu.memory_space<vmem>>, vector<8x256xf32>,
    return
  }
  func.func @transform_0(%arg0: i32) -> (i32, i32) {
    %c0_i32 = arith.constant 0 : i32
    %c0_i32_0 = arith.constant 0 : i32
    return %arg0, %c0_i32 : i32, i32
  }
  func.func @transform_1(%arg0: i32) -> (i32, i32) {
    %c0_i32 = arith.constant 0 : i32
    %c0_i32_0 = arith.constant 0 : i32
    return %arg0, %c0_i32 : i32, i32
  }
  func.func @transform_2(%arg0: i32) -> (i32, i32) {
    %c0_i32 = arith.constant 0 : i32
    %c0_i32_0 = arith.constant 0 : i32
    %c0_i32_1 = arith.constant 0 : i32
    return %c0_i32, %c0_i32_0 : i32, i32
  }
  func.func @transform_3(%arg0: i32) -> (i32, i32) {
    %c0_i32 = arith.constant 0 : i32
    %c0_i32_0 = arith.constant 0 : i32
    %c0_i32_1 = arith.constant 0 : i32
    return %c0_i32, %c0_i32_0 : i32, i32
  }
  func.func @transform_4(%arg0: i32) -> (i32, i32) {
    %c0_i32 = arith.constant 0 : i32
    %c0_i32_0 = arith.constant 0 : i32
    %c0_i32_1 = arith.constant 0 : i32
    return %c0_i32, %c0_i32_0 : i32, i32
  }
  func.func @transform_5(%arg0: i32) -> (i32, i32) {
    %c0_i32 = arith.constant 0 : i32
    %c0_i32_0 = arith.constant 0 : i32
    %c0_i32_1 = arith.constant 0 : i32
    return %c0_i32, %c0_i32_0 : i32, i32
  }
  func.func @transform_6(%arg0: i32) -> (i32, i32) {
    %c0_i32 = arith.constant 0 : i32
    %c0_i32_0 = arith.constant 0 : i32
    %c0_i32_1 = arith.constant 0 : i32
    return %c0_i32, %c0_i32_0 : i32, i32
  }
  func.func @transform_7(%arg0: i32) -> (i32, i32) {
    %c0_i32 = arith.constant 0 : i32
    %c0_i32_0 = arith.constant 0 : i32
    %c0_i32_1 = arith.constant 0 : i32
    return %c0_i32, %c0_i32_0 : i32, i32
  }
  func.func @transform_8(%arg0: i32) -> (i32, i32) {
    %c0_i32 = arith.constant 0 : i32
    %c0_i32_0 = arith.constant 0 : i32
    %c0_i32_1 = arith.constant 0 : i32
    return %c0_i32, %c0_i32_0 : i32, i32
  }
  func.func @transform_9(%arg0: i32) -> (i32, i32) {
    %c0_i32 = arith.constant 0 : i32
    %c0_i32_0 = arith.constant 0 : i32
    %c0_i32_1 = arith.constant 0 : i32
    return %c0_i32, %c0_i32_0 : i32, i32
  }
  func.func @transform_10(%arg0: i32) -> (i32, i32) {
    %c0_i32 = arith.constant 0 : i32
    %c0_i32_0 = arith.constant 0 : i32
    %c0_i32_1 = arith.constant 0 : i32
    return %c0_i32, %c0_i32_0 : i32, i32
  }
  func.func @transform_11(%arg0: i32) -> (i32, i32) {
    %c0_i32 = arith.constant 0 : i32
    %c0_i32_0 = arith.constant 0 : i32
    %c0_i32_1 = arith.constant 0 : i32
    return %c0_i32, %c0_i32_0 : i32, i32
  }
  func.func @transform_12(%arg0: i32) -> (i32, i32) {
    %c0_i32 = arith.constant 0 : i32
    %c0_i32_0 = arith.constant 0 : i32
    %c0_i32_1 = arith.constant 0 : i32
    return %c0_i32, %c0_i32_0 : i32, i32
  }
  func.func @transform_13(%arg0: i32) -> (i32, i32) {
    %c0_i32 = arith.constant 0 : i32
    %c0_i32_0 = arith.constant 0 : i32
    %c0_i32_1 = arith.constant 0 : i32
    return %c0_i32, %c0_i32_0 : i32, i32
  }
  func.func @transform_14(%arg0: i32) -> (i32, i32) {
    %c0_i32 = arith.constant 0 : i32
    %c0_i32_0 = arith.constant 0 : i32
    %c0_i32_1 = arith.constant 0 : i32
    return %c0_i32, %c0_i32_0 : i32, i32
  }
  func.func @transform_15(%arg0: i32) -> (i32, i32) {
    %c0_i32 = arith.constant 0 : i32
    %c0_i32_0 = arith.constant 0 : i32
    %c0_i32_1 = arith.constant 0 : i32
    return %c0_i32, %c0_i32_0 : i32, i32
  }
  func.func @transform_16(%arg0: i32) -> (i32, i32) {
    %c0_i32 = arith.constant 0 : i32
    %c0_i32_0 = arith.constant 0 : i32
    %c0_i32_1 = arith.constant 0 : i32
    return %c0_i32, %c0_i32_0 : i32, i32
  }
  func.func @transform_17(%arg0: i32) -> (i32, i32) {
    %c0_i32 = arith.constant 0 : i32
    %c0_i32_0 = arith.constant 0 : i32
    %c0_i32_1 = arith.constant 0 : i32
    return %c0_i32, %c0_i32_0 : i32, i32
  }
  func.func @transform_18(%arg0: i32) -> (i32, i32) {
    %c0_i32 = arith.constant 0 : i32
    %c0_i32_0 = arith.constant 0 : i32
    return %arg0, %c0_i32 : i32, i32
  }
  func.func @transform_19(%arg0: i32) -> (i32, i32) {
    %c0_i32 = arith.constant 0 : i32
    %c0_i32_0 = arith.constant 0 : i32
    return %arg0, %c0_i32 : i32, i32
  }
}

</mosaic_0001>

<bundles_post_ra>
// kernel: tpu_custom_call.1
= control target key start
LH: loop header
LB: loop body
LE: loop exit
PB: predicated region body
PF: predicated region fallthrough
CT: control target
= control target key end

     0   :  { %s4034_s0 = inlined_call_operand.vmem [shape: bf16[8,256], index: 0, kind: input, shape index: {}]   ;;  %s4035_s1 = inlined_call_operand.vmem [shape: f32[8,8], index: 1, kind: input, shape index: {}]   ;;  %s4036_s2 = inlined_call_operand.hbm [shape: bf16[256,512], index: 2, kind: input, shape index: {}]   ;;  %s4037_s3 = inlined_call_operand.vmem [shape: f32[1,512], index: 3, kind: input, shape index: {}]   ;;  %s4038_s4 = inlined_call_operand.hbm [shape: bf16[512,256], index: 4, kind: input, shape index: {}]   ;;  %s4039_s5 = inlined_call_operand.vmem [shape: f32[1,256], index: 5, kind: input, shape index: {}]   ;;  %s4040_s6 = inlined_call_operand.hbm [shape: bf16[256,128], index: 6, kind: input, shape index: {}]   ;;  %s4041_s7 = inlined_call_operand.vmem [shape: f32[1,128], index: 7, kind: input, shape index: {}]   ;;  %s4042_s8 = inlined_call_operand.vmem [shape: bf16[128,16], index: 8, kind: input, shape index: {}]   ;;  %s4043_s9 = inlined_call_operand.vmem [shape: f32[1,16], index: 9, kind: input, shape index: {}]   ;;  %s4044_s10 = inlined_call_operand.vmem [shape: bf16[8,128], index: 10, kind: input, shape index: {}]   ;;  %s4045_s11 = inlined_call_operand.vmem [shape: f32[1,128], index: 11, kind: input, shape index: {}]   ;;  %s4046_s12 = inlined_call_operand.hbm [shape: bf16[128,256], index: 12, kind: input, shape index: {}]   ;;  %s4047_s13 = inlined_call_operand.vmem [shape: f32[1,256], index: 13, kind: input, shape index: {}]   ;;  %s4048_s14 = inlined_call_operand.hbm [shape: bf16[256,512], index: 14, kind: input, shape index: {}]   ;;  %s4049_s15 = inlined_call_operand.vmem [shape: f32[1,512], index: 15, kind: input, shape index: {}]   ;;  %s4050_s16 = inlined_call_operand.hbm [shape: bf16[512,256], index: 16, kind: input, shape index: {}]   ;;  %s4051_s17 = inlined_call_operand.vmem [shape: f32[1,256], index: 17, kind: input, shape index: {}]   ;;  %s4052_s18 = inlined_call_operand.hbm [shape: f32[8,16], index: 18, kind: output, shape index: {0}]   ;;  %s4053_s19 = inlined_call_operand.hbm [shape: f32[8,256], index: 19, kind: output, shape index: {1}]  }
   0x1   :  { %4059 = sst [smem:[#allocation22_spill]] %s4034_s0 }
   0x2   :  { %4060 = sst [smem:[#allocation23_spill]] %s4035_s1 }
   0x3   :  { %4061 = sst [smem:[#allocation24_spill]] %s4036_s2 }
   0x4   :  { %4062 = sst [smem:[#allocation25_spill]] %s4037_s3 }
   0x5   :  { %4063 = sst [smem:[#allocation26_spill]] %s4053_s19 }
   0x6   :  { %25 = vsyncpa [#allocation3], 0 }
   0x7   :  { %26 = vsyncpa [#allocation6], 0 }
   0x8   :  { %27 = vsyncpa [#allocation9], 0 }
   0x9   :  { %28 = vsyncpa [#allocation12], 0 }
   0xa   :  { %29 = vsyncpa [#allocation4], 0 }
   0xb   :  { %30 = vsyncpa [#allocation15], 0  ;;  %s3693_s0 = smov [#allocation5]   ;;  %s3505_s1 = scalar_lea.hbm %s4038_s4, 8192 }
   0xc   :  { %s54_s30 = sshll.u32 %s3693_s0, 4  ;;  %p3506_p0 = scmp.ne.s32.totalorder %s4038_s4, %s3505_s1  ;;  %s55_s30 = int_to_ptr.vmem [resolvable:$true] %s54_s30 }
   0xd   :  { %p3509_p1 = scmp.lt.u32.totalorder %s3505_s1, %s4038_s4 }
   0xf   :  { %p3511_p2 = pnand %p3509_p1, %p3506_p0 }
  0x11   :  { %3514 = shalt.err (!%p3511_p2)
}
  0x12   :  { %s3515_s25 = scalar_lea.vmem %s55_s30, 8192  ;;  %p3520_p4 = scmp.lt.s32.totalorder %s55_s30, %s55_s30 }
  0x13   :  { %p3516_p3 = scmp.ne.s32.totalorder %s55_s30, %s3515_s25  ;;  %p3521_p5 = scmp.lt.s32.totalorder %s3515_s25, %s3515_s25 }
  0x15   :  { %p3522_p6 = por %p3521_p5, %p3520_p4 }
  0x17   :  { %p3523_p7 = pnand %p3522_p6, %p3516_p3 }
  0x19   :  { %3526 = shalt.err (!%p3523_p7)
}
  0x1a   :  { %s4056_s3 = smov 128   ;;  %s4057_s26 = smov 8  }
  0x1b   :  { %60 = dma.hbm_to_vmem [thread:$0]  %s4038_s4, 8192, %s55_s30, [#allocation6], %s4056_s3, %s4056_s3, %s4057_s26  }
  0x1c   :  { %s3696_s29 = smov [#allocation8]   ;;  %s3697_s20 = smov [#allocation2]  }
  0x1d   :  { %s90_s0 = sshll.u32 %s3696_s29, 4  ;;  %s40_s21 = sshll.u32 %s3697_s20, 4  ;;  %s91_s0 = int_to_ptr.vmem [resolvable:$true] %s90_s0  ;;  %s41_s21 = int_to_ptr.vmem [resolvable:$true] %s40_s21 }
  0x1e   :  { %s3527_s2 = scalar_lea.hbm %s4046_s12, 2048 }
  0x1f   :  { %p3528_p8 = scmp.ne.s32.totalorder %s4046_s12, %s3527_s2  ;;  %p3531_p9 = scmp.lt.u32.totalorder %s3527_s2, %s4046_s12 }
  0x21   :  { %p3533_p10 = pnand %p3531_p9, %p3528_p8 }
  0x23   :  { %3536 = shalt.err (!%p3533_p10)
}
  0x24   :  { %s3537_s4 = scalar_lea.vmem %s91_s0, 2048  ;;  %p3542_p12 = scmp.lt.s32.totalorder %s91_s0, %s91_s0 }
  0x25   :  { %p3538_p11 = scmp.ne.s32.totalorder %s91_s0, %s3537_s4  ;;  %p3543_p13 = scmp.lt.s32.totalorder %s3537_s4, %s3537_s4 }
  0x27   :  { %p3544_p0 = por %p3543_p13, %p3542_p12 }
  0x29   :  { %p3545_p1 = pnand %p3544_p0, %p3538_p11 }
  0x2b   :  { %3548 = shalt.err (!%p3545_p1)
}
  0x2c   :  { %96 = dma.hbm_to_vmem [thread:$0]  %s4046_s12, 2048, %s91_s0, [#allocation9], %s4056_s3, %s4056_s3, %s4057_s26  }
  0x2d   :  { %s4064_s29 = sld [smem:[#allocation24_spill]] }
  0x33   :  { %s3549_s20 = scalar_lea.hbm %s4064_s29, 8192 }
  0x34   :  { %p3550_p2 = scmp.ne.s32.totalorder %s4064_s29, %s3549_s20  ;;  %p3553_p3 = scmp.lt.u32.totalorder %s3549_s20, %s4064_s29 }
  0x36   :  { %p3555_p4 = pnand %p3553_p3, %p3550_p2 }
  0x38   :  { %3558 = shalt.err (!%p3555_p4)
}
  0x39   :  { %s3559_s24 = scalar_lea.vmem %s41_s21, 8192  ;;  %p3564_p6 = scmp.lt.s32.totalorder %s41_s21, %s41_s21 }
  0x3a   :  { %p3560_p5 = scmp.ne.s32.totalorder %s41_s21, %s3559_s24  ;;  %p3565_p7 = scmp.lt.s32.totalorder %s3559_s24, %s3559_s24 }
  0x3c   :  { %p3566_p8 = por %p3565_p7, %p3564_p6 }
  0x3e   :  { %p3567_p9 = pnand %p3566_p8, %p3560_p5 }
  0x40   :  { %3570 = shalt.err (!%p3567_p9)
}
  0x41   :  { %s3698_s12 = smov 256   ;;  %s3699_s0 = smov 16  }
  0x42   :  { %46 = dma.hbm_to_vmem [thread:$0]  %s4064_s29, 8192, %s41_s21, [#allocation3], %s3698_s12, %s3698_s12, %s3699_s0  }
  0x43   :  { %s3700_s30 = smov [#allocation7]   ;;  %s3571_s20 = scalar_lea.hbm %s4040_s6, 2048 }
  0x44   :  { %s68_s27 = sshll.u32 %s3700_s30, 4  ;;  %p3572_p10 = scmp.ne.s32.totalorder %s4040_s6, %s3571_s20  ;;  %s69_s27 = int_to_ptr.vmem [resolvable:$true] %s68_s27 }
  0x45   :  { %p3575_p11 = scmp.lt.u32.totalorder %s3571_s20, %s4040_s6 }
  0x47   :  { %p3577_p12 = pnand %p3575_p11, %p3572_p10 }
  0x49   :  { %3580 = shalt.err (!%p3577_p12)
}
  0x4a   :  { %s3581_s24 = scalar_lea.vmem %s69_s27, 2048  ;;  %p3586_p0 = scmp.lt.s32.totalorder %s69_s27, %s69_s27 }
  0x4b   :  { %p3582_p13 = scmp.ne.s32.totalorder %s69_s27, %s3581_s24  ;;  %p3587_p1 = scmp.lt.s32.totalorder %s3581_s24, %s3581_s24 }
  0x4d   :  { %p3588_p2 = por %p3587_p1, %p3586_p0 }
  0x4f   :  { %p3589_p3 = pnand %p3588_p2, %p3582_p13 }
  0x51   :  { %3592 = shalt.err (!%p3589_p3)
}
  0x52   :  { %s3701_s21 = smov 64   ;;  %s3702_s29 = smov 4  }
  0x53   :  { %74 = dma.hbm_to_vmem [thread:$0]  %s4040_s6, 2048, %s69_s27, [#allocation6], %s3701_s21, %s3701_s21, %s3702_s29  }
  0x54   :  { %s3703_s30 = smov [#allocation10]   ;;  %s3704_s19 = smov [#allocation11]  }
  0x55   :  { %s104_s28 = sshll.u32 %s3703_s30, 4  ;;  %s118_s1 = sshll.u32 %s3704_s19, 4  ;;  %s105_s28 = int_to_ptr.vmem [resolvable:$true] %s104_s28  ;;  %s3868_s1 = int_to_ptr.vmem [resolvable:$true] %s118_s1 }
  0x56   :  { %s3593_s2 = scalar_lea.hbm %s4048_s14, 8192 }
  0x57   :  { %p3594_p4 = scmp.ne.s32.totalorder %s4048_s14, %s3593_s2  ;;  %p3597_p5 = scmp.lt.u32.totalorder %s3593_s2, %s4048_s14 }
  0x59   :  { %p3599_p6 = pnand %p3597_p5, %p3594_p4 }
  0x5b   :  { %3602 = shalt.err (!%p3599_p6)
}
  0x5c   :  { %s3603_s6 = scalar_lea.vmem %s105_s28, 8192  ;;  %p3608_p8 = scmp.lt.s32.totalorder %s105_s28, %s105_s28 }
  0x5d   :  { %p3604_p7 = scmp.ne.s32.totalorder %s105_s28, %s3603_s6  ;;  %p3609_p9 = scmp.lt.s32.totalorder %s3603_s6, %s3603_s6 }
  0x5f   :  { %p3610_p10 = por %p3609_p9, %p3608_p8 }
  0x61   :  { %p3611_p11 = pnand %p3610_p10, %p3604_p7 }
  0x63   :  { %3614 = shalt.err (!%p3611_p11)
}
  0x64   :  { %110 = dma.hbm_to_vmem [thread:$0]  %s4048_s14, 8192, %s105_s28, [#allocation9], %s3698_s12, %s3698_s12, %s3699_s0  }
  0x65   :  { %s3615_s3 = scalar_lea.hbm %s4050_s16, 8192 }
  0x66   :  { %p3616_p12 = scmp.ne.s32.totalorder %s4050_s16, %s3615_s3  ;;  %p3619_p13 = scmp.lt.u32.totalorder %s3615_s3, %s4050_s16 }
  0x68   :  { %p3621_p0 = pnand %p3619_p13, %p3616_p12 }
  0x6a   :  { %3624 = shalt.err (!%p3621_p0)
}
  0x6b   :  { %s3625_s20 = scalar_lea.vmem %s3868_s1, 8192  ;;  %p3630_p2 = scmp.lt.s32.totalorder %s3868_s1, %s3868_s1 }
  0x6c   :  { %p3626_p1 = scmp.ne.s32.totalorder %s3868_s1, %s3625_s20  ;;  %p3631_p3 = scmp.lt.s32.totalorder %s3625_s20, %s3625_s20 }
  0x6e   :  { %p3632_p4 = por %p3631_p3, %p3630_p2 }
  0x70   :  { %p3633_p5 = pnand %p3632_p4, %p3626_p1 }
  0x72   :  { %3636 = shalt.err (!%p3633_p5)
}
  0x73   :  { %s4065_s14 = smov 8   ;;  %s4066_s12 = smov 128  }
  0x74   :  { %124 = dma.hbm_to_vmem [thread:$0]  %s4050_s16, 8192, %s3868_s1, [#allocation12], %s4066_s12, %s4066_s12, %s4065_s14  }
  0x75   :  { %3681 = dma.done.wait [#allocation3], 8192  }
  0x76   :  { %3682 = vsyncadd [#allocation3], 4294959104 }
  0x77   :  { %3683 = dma.done.wait [#allocation6], 10240  }
  0x78   :  { %3684 = vsyncadd [#allocation6], 4294957056 }
  0x79   :  { %3685 = dma.done.wait [#allocation9], 10240  }
  0x7a   :  { %3686 = vsyncadd [#allocation9], 4294957056 }
  0x7b   :  { %3687 = dma.done.wait [#allocation12], 8192  }
  0x7c   :  { %3688 = vsyncadd [#allocation12], 4294959104  ;;  %v3061_v0 = vld [vmem:[#allocation2 + $0x4] ss:$16 sps:$4 sm:$0xff]   ;;  %v3063_v1 = vld [vmem:[#allocation2] ss:$16 sps:$4 sm:$0xff]  }
  0x7d   :  { %560 = vmatprep.subr.bf16.mxu0 %v3061_v0  ;;  %v3064_v2 = vld [vmem:[#allocation2 + $0x24] ss:$16 sps:$4 sm:$0xff]   ;;  %v3066_v3 = vld [vmem:[#allocation2 + $0x20] ss:$16 sps:$4 sm:$0xff]   ;;  %s4067_s22 = sld [smem:[#allocation22_spill]]  ;;  %s4068_s24 = sld [smem:[#allocation25_spill]] }
  0x7e   :  { %561 = vmatpush1.bf16.msra.mxu0 %v3063_v1  ;;  %v3067_v4 = vld [vmem:[#allocation2 + $0x44] ss:$16 sps:$4 sm:$0xff]   ;;  %v3069_v5 = vld [vmem:[#allocation2 + $0x40] ss:$16 sps:$4 sm:$0xff]   ;;  %v3113_v34 = vld [vmem:[#allocation2 + $0xc] ss:$16 sps:$4 sm:$0xff]  }
  0x7f   :  { %562 = vmatprep.subr.bf16.mxu0 %v3064_v2  ;;  %v3070_v6 = vld [vmem:[#allocation2 + $0x64] ss:$16 sps:$4 sm:$0xff]   ;;  %v3072_v7 = vld [vmem:[#allocation2 + $0x60] ss:$16 sps:$4 sm:$0xff]   ;;  %v3111_v35 = vld [vmem:[#allocation2 + $0x8] ss:$16 sps:$4 sm:$0xff]  }
  0x80   :  { %v3073_v8 = vld [vmem:[#allocation2 + $0x84] ss:$16 sps:$4 sm:$0xff]   ;;  %v3075_v9 = vld [vmem:[#allocation2 + $0x80] ss:$16 sps:$4 sm:$0xff]   ;;  %v3116_v37 = vld [vmem:[#allocation2 + $0x2c] ss:$16 sps:$4 sm:$0xff]  }
  0x81   :  { %v3076_v10 = vld [vmem:[#allocation2 + $0xa4] ss:$16 sps:$4 sm:$0xff]   ;;  %v3078_v11 = vld [vmem:[#allocation2 + $0xa0] ss:$16 sps:$4 sm:$0xff]   ;;  %v3114_v38 = vld [vmem:[#allocation2 + $0x28] ss:$16 sps:$4 sm:$0xff]  }
  0x82   :  { %563 = vmatpush1.bf16.msra.mxu0 %v3066_v3  ;;  %v3079_v12 = vld [vmem:[#allocation2 + $0xc4] ss:$16 sps:$4 sm:$0xff]   ;;  %v3081_v15 = vld [vmem:[#allocation2 + $0xc0] ss:$16 sps:$4 sm:$0xff]   ;;  %v3119_v39 = vld [vmem:[#allocation2 + $0x4c] ss:$16 sps:$4 sm:$0xff]  }
  0x83   :  { %564 = vmatprep.subr.bf16.mxu0 %v3067_v4  ;;  %v146_v13 = vld [vmem:[%s4067_s22] sm:$0xff]  ;;  %v3117_v40 = vld [vmem:[#allocation2 + $0x48] ss:$16 sps:$4 sm:$0xff]   ;;  %v3122_v41 = vld [vmem:[#allocation2 + $0x6c] ss:$16 sps:$4 sm:$0xff]   ;;  %vm3706_vm0 = vmmov 0  }
  0x84   :  { %v2669_v14 = vcombine.high %v146_v13, %v146_v13  ;;  %v3082_v16 = vld [vmem:[#allocation2 + $0xe4] ss:$16 sps:$4 sm:$0xff]   ;;  %v3084_v17 = vld [vmem:[#allocation2 + $0xe0] ss:$16 sps:$4 sm:$0xff]   ;;  %v3908_v36 = vcombine.low %v146_v13, %v146_v13  ;;  %v3120_v42 = vld [vmem:[#allocation2 + $0x68] ss:$16 sps:$4 sm:$0xff]  }
  0x85   :  { %v3085_v18 = vld [vmem:[#allocation2 + $0x104] ss:$16 sps:$4 sm:$0xff]   ;;  %v3087_v19 = vld [vmem:[#allocation2 + $0x100] ss:$16 sps:$4 sm:$0xff]   ;;  %v3125_v43 = vld [vmem:[#allocation2 + $0x8c] ss:$16 sps:$4 sm:$0xff]  }
  0x86   :  { %565 = vmatpush1.bf16.msra.mxu0 %v3069_v5  ;;  %592 = vmatprep.mubr.bf16.mxu0 %v2669_v14  ;;  %v3088_v20 = vld [vmem:[#allocation2 + $0x124] ss:$16 sps:$4 sm:$0xff]   ;;  %v3090_v21 = vld [vmem:[#allocation2 + $0x120] ss:$16 sps:$4 sm:$0xff]   ;;  %v3123_v44 = vld [vmem:[#allocation2 + $0x88] ss:$16 sps:$4 sm:$0xff]  }
  0x87   :  { %566 = vmatprep.subr.bf16.mxu0 %v3070_v6  ;;  %v3091_v22 = vld [vmem:[#allocation2 + $0x144] ss:$16 sps:$4 sm:$0xff]   ;;  %v3093_v23 = vld [vmem:[#allocation2 + $0x140] ss:$16 sps:$4 sm:$0xff]   ;;  %v3128_v45 = vld [vmem:[#allocation2 + $0xac] ss:$16 sps:$4 sm:$0xff]  }
  0x88   :  { %v3094_v24 = vld [vmem:[#allocation2 + $0x164] ss:$16 sps:$4 sm:$0xff]   ;;  %v3096_v25 = vld [vmem:[#allocation2 + $0x160] ss:$16 sps:$4 sm:$0xff]   ;;  %v3126_v46 = vld [vmem:[#allocation2 + $0xa8] ss:$16 sps:$4 sm:$0xff]  }
  0x89   :  { %v3097_v26 = vld [vmem:[#allocation2 + $0x184] ss:$16 sps:$4 sm:$0xff]   ;;  %v3099_v27 = vld [vmem:[#allocation2 + $0x180] ss:$16 sps:$4 sm:$0xff]   ;;  %v3131_v47 = vld [vmem:[#allocation2 + $0xcc] ss:$16 sps:$4 sm:$0xff]  }
  0x8a   :  { %567 = vmatpush1.bf16.msra.mxu0 %v3072_v7  ;;  %v3100_v28 = vld [vmem:[#allocation2 + $0x1a4] ss:$16 sps:$4 sm:$0xff]   ;;  %v3102_v29 = vld [vmem:[#allocation2 + $0x1a0] ss:$16 sps:$4 sm:$0xff]   ;;  %v3129_v48 = vld [vmem:[#allocation2 + $0xc8] ss:$16 sps:$4 sm:$0xff]  }
  0x8b   :  { %568 = vmatprep.subr.bf16.mxu0 %v3073_v8  ;;  %v3103_v30 = vld [vmem:[#allocation2 + $0x1c4] ss:$16 sps:$4 sm:$0xff]   ;;  %v3105_v31 = vld [vmem:[#allocation2 + $0x1c0] ss:$16 sps:$4 sm:$0xff]   ;;  %v3134_v49 = vld [vmem:[#allocation2 + $0xec] ss:$16 sps:$4 sm:$0xff]  }
  0x8c   :  { %v3106_v32 = vld [vmem:[#allocation2 + $0x1e4] ss:$16 sps:$4 sm:$0xff]   ;;  %v3108_v33 = vld [vmem:[#allocation2 + $0x1e0] ss:$16 sps:$4 sm:$0xff]   ;;  %v3132_v50 = vld [vmem:[#allocation2 + $0xe8] ss:$16 sps:$4 sm:$0xff]  }
  0x8d   :  { %v3137_v51 = vld [vmem:[#allocation2 + $0x10c] ss:$16 sps:$4 sm:$0xff]   ;;  %v3135_v52 = vld [vmem:[#allocation2 + $0x108] ss:$16 sps:$4 sm:$0xff]   ;;  %vm1449_vm1 = vcmask 1043456   ;;  %vm1420_vm2 = vcmask 130048  }
  0x8e   :  { %569 = vmatpush1.bf16.msra.mxu0 %v3075_v9  ;;  %v3140_v53 = vld [vmem:[#allocation2 + $0x12c] ss:$16 sps:$4 sm:$0xff]   ;;  %v3138_v54 = vld [vmem:[#allocation2 + $0x128] ss:$16 sps:$4 sm:$0xff]   ;;  %vm1445_vm3 = vcmask 64512  }
  0x8f   :  { %570 = vmatprep.subr.bf16.mxu0 %v3076_v10  ;;  %v3143_v55 = vld [vmem:[#allocation2 + $0x14c] ss:$16 sps:$4 sm:$0xff]   ;;  %v3141_v56 = vld [vmem:[#allocation2 + $0x148] ss:$16 sps:$4 sm:$0xff]  }
  0x90   :  { %v3146_v57 = vld [vmem:[#allocation2 + $0x16c] ss:$16 sps:$4 sm:$0xff]   ;;  %v3144_v58 = vld [vmem:[#allocation2 + $0x168] ss:$16 sps:$4 sm:$0xff]  }
  0x91   :  { %v3149_v59 = vld [vmem:[#allocation2 + $0x18c] ss:$16 sps:$4 sm:$0xff]   ;;  %v3147_v60 = vld [vmem:[#allocation2 + $0x188] ss:$16 sps:$4 sm:$0xff]  }
  0x92   :  { %571 = vmatpush1.bf16.msra.mxu0 %v3078_v11  ;;  %v3152_v61 = vld [vmem:[#allocation2 + $0x1ac] ss:$16 sps:$4 sm:$0xff]   ;;  %v3150_v62 = vld [vmem:[#allocation2 + $0x1a8] ss:$16 sps:$4 sm:$0xff]  }
  0x93   :  { %572 = vmatprep.subr.bf16.mxu0 %v3079_v12  ;;  %v3155_v63 = vld [vmem:[#allocation2 + $0x1cc] ss:$16 sps:$4 sm:$0xff]   ;;  %v3153_v0 = vld [vmem:[#allocation2 + $0x1c8] ss:$16 sps:$4 sm:$0xff]  }
  0x94   :  { %v3158_v1 = vld [vmem:[#allocation2 + $0x1ec] ss:$16 sps:$4 sm:$0xff]   ;;  %v3156_v2 = vld [vmem:[#allocation2 + $0x1e8] ss:$16 sps:$4 sm:$0xff]  }
  0x95   :  { %v3161_v3 = vld [vmem:[#allocation5 + $0x4] ss:$8 sps:$4 sm:$0xff]   ;;  %v3159_v4 = vld [vmem:[#allocation5] ss:$8 sps:$4 sm:$0xff]   ;;  %v3164_v5 = vld [vmem:[#allocation5 + $0x14] ss:$8 sps:$4 sm:$0xff]  }
  0x96   :  { %573 = vmatpush1.bf16.msra.mxu0 %v3081_v15  ;;  %v3162_v6 = vld [vmem:[#allocation5 + $0x10] ss:$8 sps:$4 sm:$0xff]   ;;  %v3167_v7 = vld [vmem:[#allocation5 + $0x24] ss:$8 sps:$4 sm:$0xff]   ;;  %v3165_v8 = vld [vmem:[#allocation5 + $0x20] ss:$8 sps:$4 sm:$0xff]  }
  0x97   :  { %574 = vmatprep.subr.bf16.mxu0 %v3082_v16  ;;  %v3170_v9 = vld [vmem:[#allocation5 + $0x34] ss:$8 sps:$4 sm:$0xff]   ;;  %v3168_v10 = vld [vmem:[#allocation5 + $0x30] ss:$8 sps:$4 sm:$0xff]   ;;  %v3173_v11 = vld [vmem:[#allocation5 + $0x44] ss:$8 sps:$4 sm:$0xff]  }
  0x98   :  { %v3171_v12 = vld [vmem:[#allocation5 + $0x40] ss:$8 sps:$4 sm:$0xff]   ;;  %v3176_v13 = vld [vmem:[#allocation5 + $0x54] ss:$8 sps:$4 sm:$0xff]   ;;  %v3179_v15 = vld [vmem:[#allocation5 + $0x64] ss:$8 sps:$4 sm:$0xff]  }
  0x99   :  { %v3177_v16 = vld [vmem:[#allocation5 + $0x60] ss:$8 sps:$4 sm:$0xff]  }
  0x9a   :  { %575 = vmatpush1.bf16.msra.mxu0 %v3084_v17  ;;  %v3182_v17 = vld [vmem:[#allocation5 + $0x74] ss:$8 sps:$4 sm:$0xff]  }
  0x9b   :  { %576 = vmatprep.subr.bf16.mxu0 %v3085_v18  ;;  %v3180_v18 = vld [vmem:[#allocation5 + $0x70] ss:$8 sps:$4 sm:$0xff]  }
  0x9e   :  { %577 = vmatpush1.bf16.msra.mxu0 %v3087_v19  ;;  %v3185_v19 = vld [vmem:[#allocation5 + $0x84] ss:$8 sps:$4 sm:$0xff]  }
  0x9f   :  { %578 = vmatprep.subr.bf16.mxu0 %v3088_v20  ;;  %v3183_v20 = vld [vmem:[#allocation5 + $0x80] ss:$8 sps:$4 sm:$0xff]  }
  0xa2   :  { %579 = vmatpush1.bf16.msra.mxu0 %v3090_v21  ;;  %v3188_v21 = vld [vmem:[#allocation5 + $0x94] ss:$8 sps:$4 sm:$0xff]  }
  0xa3   :  { %580 = vmatprep.subr.bf16.mxu0 %v3091_v22  ;;  %v3186_v22 = vld [vmem:[#allocation5 + $0x90] ss:$8 sps:$4 sm:$0xff]  }
  0xa6   :  { %581 = vmatpush1.bf16.msra.mxu0 %v3093_v23  ;;  %v3191_v23 = vld [vmem:[#allocation5 + $0xa4] ss:$8 sps:$4 sm:$0xff]  }
  0xa7   :  { %582 = vmatprep.subr.bf16.mxu0 %v3094_v24  ;;  %v3189_v24 = vld [vmem:[#allocation5 + $0xa0] ss:$8 sps:$4 sm:$0xff]  }
  0xaa   :  { %583 = vmatpush1.bf16.msra.mxu0 %v3096_v25  ;;  %v3194_v25 = vld [vmem:[#allocation5 + $0xb4] ss:$8 sps:$4 sm:$0xff]  }
  0xab   :  { %584 = vmatprep.subr.bf16.mxu0 %v3097_v26  ;;  %v3192_v26 = vld [vmem:[#allocation5 + $0xb0] ss:$8 sps:$4 sm:$0xff]  }
  0xae   :  { %585 = vmatpush1.bf16.msra.mxu0 %v3099_v27  ;;  %v3197_v27 = vld [vmem:[#allocation5 + $0xc4] ss:$8 sps:$4 sm:$0xff]  }
  0xaf   :  { %586 = vmatprep.subr.bf16.mxu0 %v3100_v28  ;;  %v3195_v28 = vld [vmem:[#allocation5 + $0xc0] ss:$8 sps:$4 sm:$0xff]  }
  0xb2   :  { %587 = vmatpush1.bf16.msra.mxu0 %v3102_v29  ;;  %v3200_v29 = vld [vmem:[#allocation5 + $0xd4] ss:$8 sps:$4 sm:$0xff]  }
  0xb3   :  { %588 = vmatprep.subr.bf16.mxu0 %v3103_v30  ;;  %v3198_v30 = vld [vmem:[#allocation5 + $0xd0] ss:$8 sps:$4 sm:$0xff]  }
  0xb6   :  { %589 = vmatpush1.bf16.msra.mxu0 %v3105_v31  ;;  %v3203_v31 = vld [vmem:[#allocation5 + $0xe4] ss:$8 sps:$4 sm:$0xff]  }
  0xb7   :  { %590 = vmatprep.subr.bf16.mxu0 %v3106_v32  ;;  %v3201_v32 = vld [vmem:[#allocation5 + $0xe0] ss:$8 sps:$4 sm:$0xff]  }
  0xba   :  { %591 = vmatpush1.bf16.msra.mxu0 %v3108_v33  ;;  %v3206_v33 = vld [vmem:[#allocation5 + $0xf4] ss:$8 sps:$4 sm:$0xff]  }
  0xbb   :  { %601 = vmatprep.subr.bf16.mxu0 %v3113_v34  ;;  %v3204_v34 = vld [vmem:[#allocation5 + $0xf0] ss:$8 sps:$4 sm:$0xff]  }
  0xbd   :  { %593 = vmatmul.mubr.bf16.vlgmr.msra.gmra.mrb[0].mxu0 %v3908_v36 }
  0xbe   :  { %602 = vmatpush1.bf16.msra.mxu0 %v3111_v35  ;;  %633 = vmatprep.mubr.bf16.mxu0 %v2669_v14  ;;  %v3174_v14 = vld [vmem:[#allocation5 + $0x50] ss:$8 sps:$4 sm:$0xff]   ;;  %v3209_v35 = vld [vmem:[#allocation5 + $0x104] ss:$8 sps:$4 sm:$0xff]  }
  0xbf   :  { %603 = vmatprep.subr.bf16.mxu0 %v3116_v37  ;;  %v3256_v37 = vld [vmem:[#allocation7] sm:$0xff]  }
  0xc2   :  { %604 = vmatpush1.bf16.msra.mxu0 %v3114_v38  ;;  %v3257_v38 = vld [vmem:[#allocation7 + $0x48] sm:$0xff]  }
  0xc3   :  { %605 = vmatprep.subr.bf16.mxu0 %v3119_v39  ;;  %v3258_v39 = vld [vmem:[#allocation7 + $0x8] sm:$0xff]  }
  0xc6   :  { %606 = vmatpush1.bf16.msra.mxu0 %v3117_v40  ;;  %v3259_v40 = vld [vmem:[#allocation7 + $0x50] sm:$0xff]  }
  0xc7   :  { %607 = vmatprep.subr.bf16.mxu0 %v3122_v41  ;;  %v3260_v41 = vld [vmem:[#allocation7 + $0x10] sm:$0xff]  }
  0xca   :  { %608 = vmatpush1.bf16.msra.mxu0 %v3120_v42  ;;  %v3261_v42 = vld [vmem:[#allocation7 + $0x58] sm:$0xff]  }
  0xcb   :  { %609 = vmatprep.subr.bf16.mxu0 %v3125_v43  ;;  %v3262_v43 = vld [vmem:[#allocation7 + $0x18] sm:$0xff]  }
  0xce   :  { %610 = vmatpush1.bf16.msra.mxu0 %v3123_v44  ;;  %v3263_v44 = vld [vmem:[#allocation7 + $0x60] sm:$0xff]  }
  0xcf   :  { %611 = vmatprep.subr.bf16.mxu0 %v3128_v45  ;;  %v3264_v45 = vld [vmem:[#allocation7 + $0x20] sm:$0xff]  }
  0xd2   :  { %612 = vmatpush1.bf16.msra.mxu0 %v3126_v46  ;;  %v3265_v46 = vld [vmem:[#allocation7 + $0x68] sm:$0xff]  }
  0xd3   :  { %613 = vmatprep.subr.bf16.mxu0 %v3131_v47  ;;  %v3266_v47 = vld [vmem:[#allocation7 + $0x28] sm:$0xff]  }
  0xd6   :  { %614 = vmatpush1.bf16.msra.mxu0 %v3129_v48  ;;  %v213_v48 = vlaneseq }
  0xd7   :  { %615 = vmatprep.subr.bf16.mxu0 %v3134_v49 }
  0xd8   :  { %v3912_v49 = vshrl.u32 %v213_v48, 7  ;;  %v3269_v48 = vld [vmem:[#allocation7 + $0x78] sm:$0xff]  }
  0xda   :  { %616 = vmatpush1.bf16.msra.mxu0 %v3132_v50  ;;  %v3915_v50 = vsub.s32 0, %v3912_v49 }
  0xdb   :  { %617 = vmatprep.subr.bf16.mxu0 %v3137_v51  ;;  %v3920_v51 = vld [vmem:[%s4068_s24] sm:$0xf]  ;;  %s4069_s24 = sld [smem:[#allocation23_spill]] }
  0xde   :  { %618 = vmatpush1.bf16.msra.mxu0 %v3135_v52  ;;  %v3923_v52 = vsub.s32 1, %v3912_v49 }
  0xdf   :  { %619 = vmatprep.subr.bf16.mxu0 %v3140_v53  ;;  %v216_v53 = vrot.slane %v3920_v51, %v3915_v50 }
  0xe2   :  { %620 = vmatpush1.bf16.msra.mxu0 %v3138_v54  ;;  %v220_v54 = vrot.slane %v3920_v51, %v3923_v52 }
  0xe3   :  { %621 = vmatprep.subr.bf16.mxu0 %v3143_v55 }
  0xe6   :  { %622 = vmatpush1.bf16.msra.mxu0 %v3141_v56 }
  0xe7   :  { %623 = vmatprep.subr.bf16.mxu0 %v3146_v57 }
  0xea   :  { %624 = vmatpush1.bf16.msra.mxu0 %v3144_v58 }
  0xeb   :  { %625 = vmatprep.subr.bf16.mxu0 %v3149_v59 }
  0xee   :  { %626 = vmatpush1.bf16.msra.mxu0 %v3147_v60 }
  0xef   :  { %627 = vmatprep.subr.bf16.mxu0 %v3152_v61 }
  0xf2   :  { %628 = vmatpush1.bf16.msra.mxu0 %v3150_v62 }
  0xf3   :  { %629 = vmatprep.subr.bf16.mxu0 %v3155_v63 }
  0xf6   :  { %630 = vmatpush1.bf16.msra.mxu0 %v3153_v0 }
  0xf7   :  { %631 = vmatprep.subr.bf16.mxu0 %v3158_v1  ;;  %v3207_v1 = vld [vmem:[#allocation5 + $0x100] ss:$8 sps:$4 sm:$0xff]  }
  0xfa   :  { %632 = vmatpush1.bf16.msra.mxu0 %v3156_v2  ;;  %v3212_v2 = vld [vmem:[#allocation5 + $0x114] ss:$8 sps:$4 sm:$0xff]  }
  0xfb   :  { %1046 = vmatprep.subr.bf16.mxu0 %v3161_v3  ;;  %v3210_v3 = vld [vmem:[#allocation5 + $0x110] ss:$8 sps:$4 sm:$0xff]  }
  0xfd   :  { %634 = vmatmul.mubr.bf16.vlgmr.msra.gmra.mrb[4].mxu0 %v3908_v36  ;;  %v3255_v36 = vld [vmem:[#allocation7 + $0x40] sm:$0xff]  }
  0xfe   :  { %1047 = vmatpush1.bf16.msra.mxu0 %v3159_v4  ;;  %2972 = vmatprep.subr.bf16.mxu1 %v3255_v36  ;;  %v3215_v4 = vld [vmem:[#allocation5 + $0x124] ss:$8 sps:$4 sm:$0xff]  }
  0xff   :  { %1048 = vmatprep.subr.bf16.mxu0 %v3164_v5  ;;  %2973 = vmatpush3.bf16.msra.mxu1 %v3256_v37  ;;  %v3213_v5 = vld [vmem:[#allocation5 + $0x120] ss:$8 sps:$4 sm:$0xff]  }
 0x100   :  { %2974 = vmatprep.subr.bf16.mxu1 %v3257_v38 }
 0x102   :  { %1049 = vmatpush1.bf16.msra.mxu0 %v3162_v6  ;;  %v3218_v6 = vld [vmem:[#allocation5 + $0x134] ss:$8 sps:$4 sm:$0xff]  }
 0x103   :  { %1050 = vmatprep.subr.bf16.mxu0 %v3167_v7  ;;  %2975 = vmatpush3.bf16.msra.mxu1 %v3258_v39  ;;  %v3216_v7 = vld [vmem:[#allocation5 + $0x130] ss:$8 sps:$4 sm:$0xff]  }
 0x104   :  { %2976 = vmatprep.subr.bf16.mxu1 %v3259_v40  ;;  %v3252_v40 = vld [vmem:[#allocation5 + $0x1f0] ss:$8 sps:$4 sm:$0xff]  }
 0x106   :  { %1051 = vmatpush1.bf16.msra.mxu0 %v3165_v8  ;;  %v3221_v8 = vld [vmem:[#allocation5 + $0x144] ss:$8 sps:$4 sm:$0xff]  }
 0x107   :  { %1052 = vmatprep.subr.bf16.mxu0 %v3170_v9  ;;  %2977 = vmatpush3.bf16.msra.mxu1 %v3260_v41  ;;  %v3219_v9 = vld [vmem:[#allocation5 + $0x140] ss:$8 sps:$4 sm:$0xff]  }
 0x108   :  { %2978 = vmatprep.subr.bf16.mxu1 %v3261_v42 }
 0x10a   :  { %1053 = vmatpush1.bf16.msra.mxu0 %v3168_v10  ;;  %v3224_v10 = vld [vmem:[#allocation5 + $0x154] ss:$8 sps:$4 sm:$0xff]  }
 0x10b   :  { %1054 = vmatprep.subr.bf16.mxu0 %v3173_v11  ;;  %2979 = vmatpush3.bf16.msra.mxu1 %v3262_v43  ;;  %v3222_v11 = vld [vmem:[#allocation5 + $0x150] ss:$8 sps:$4 sm:$0xff]  }
 0x10c   :  { %2980 = vmatprep.subr.bf16.mxu1 %v3263_v44 }
 0x10e   :  { %1055 = vmatpush1.bf16.msra.mxu0 %v3171_v12  ;;  %v3227_v12 = vld [vmem:[#allocation5 + $0x164] ss:$8 sps:$4 sm:$0xff]  }
 0x10f   :  { %1056 = vmatprep.subr.bf16.mxu0 %v3176_v13  ;;  %2981 = vmatpush3.bf16.msra.mxu1 %v3264_v45  ;;  %v3225_v13 = vld [vmem:[#allocation5 + $0x160] ss:$8 sps:$4 sm:$0xff]  }
 0x110   :  { %2982 = vmatprep.subr.bf16.mxu1 %v3265_v46  ;;  %v3267_v46 = vld [vmem:[#allocation7 + $0x70] sm:$0xff]  }
 0x112   :  { %1057 = vmatpush1.bf16.msra.mxu0 %v3174_v14  ;;  %v3230_v14 = vld [vmem:[#allocation5 + $0x174] ss:$8 sps:$4 sm:$0xff]  }
 0x113   :  { %1058 = vmatprep.subr.bf16.mxu0 %v3179_v15  ;;  %2983 = vmatpush3.bf16.msra.mxu1 %v3266_v47  ;;  %v3228_v15 = vld [vmem:[#allocation5 + $0x170] ss:$8 sps:$4 sm:$0xff]  }
 0x114   :  { %v3268_v47 = vld [vmem:[#allocation7 + $0x30] sm:$0xff]   ;;  %2984 = vmatprep.subr.bf16.mxu1 %v3267_v46 }
 0x115   :  { %v3288_v46 = vld [vmem:[#allocation8 + $0x30] ss:$8 sps:$4 sm:$0xff]  }
 0x116   :  { %1059 = vmatpush1.bf16.msra.mxu0 %v3177_v16  ;;  %v3233_v16 = vld [vmem:[#allocation5 + $0x184] ss:$8 sps:$4 sm:$0xff]  }
 0x117   :  { %1060 = vmatprep.subr.bf16.mxu0 %v3182_v17  ;;  %v3231_v17 = vld [vmem:[#allocation5 + $0x180] ss:$8 sps:$4 sm:$0xff]   ;;  %2985 = vmatpush3.bf16.msra.mxu1 %v3268_v47  ;;  %v3293_v47 = vld [vmem:[#allocation8 + $0x44] ss:$8 sps:$4 sm:$0xff]  }
 0x118   :  { %2986 = vmatprep.subr.bf16.mxu1 %v3269_v48  ;;  %v3291_v48 = vld [vmem:[#allocation8 + $0x40] ss:$8 sps:$4 sm:$0xff]  }
 0x11a   :  { %1061 = vmatpush1.bf16.msra.mxu0 %v3180_v18  ;;  %v3236_v18 = vld [vmem:[#allocation5 + $0x194] ss:$8 sps:$4 sm:$0xff]  }
 0x11b   :  { %1062 = vmatprep.subr.bf16.mxu0 %v3185_v19  ;;  %v3234_v19 = vld [vmem:[#allocation5 + $0x190] ss:$8 sps:$4 sm:$0xff]  }
 0x11e   :  { %1063 = vmatpush1.bf16.msra.mxu0 %v3183_v20  ;;  %v3239_v20 = vld [vmem:[#allocation5 + $0x1a4] ss:$8 sps:$4 sm:$0xff]  }
 0x11f   :  { %1064 = vmatprep.subr.bf16.mxu0 %v3188_v21  ;;  %v3237_v21 = vld [vmem:[#allocation5 + $0x1a0] ss:$8 sps:$4 sm:$0xff]  }
 0x122   :  { %1065 = vmatpush1.bf16.msra.mxu0 %v3186_v22  ;;  %v3242_v22 = vld [vmem:[#allocation5 + $0x1b4] ss:$8 sps:$4 sm:$0xff]  }
 0x123   :  { %1066 = vmatprep.subr.bf16.mxu0 %v3191_v23  ;;  %v3240_v23 = vld [vmem:[#allocation5 + $0x1b0] ss:$8 sps:$4 sm:$0xff]  }
 0x126   :  { %1067 = vmatpush1.bf16.msra.mxu0 %v3189_v24  ;;  %v3245_v24 = vld [vmem:[#allocation5 + $0x1c4] ss:$8 sps:$4 sm:$0xff]  }
 0x127   :  { %1068 = vmatprep.subr.bf16.mxu0 %v3194_v25  ;;  %v3243_v25 = vld [vmem:[#allocation5 + $0x1c0] ss:$8 sps:$4 sm:$0xff]  }
 0x12a   :  { %1069 = vmatpush1.bf16.msra.mxu0 %v3192_v26  ;;  %v3248_v26 = vld [vmem:[#allocation5 + $0x1d4] ss:$8 sps:$4 sm:$0xff]  }
 0x12b   :  { %1070 = vmatprep.subr.bf16.mxu0 %v3197_v27  ;;  %v223_v27 = vsub.s32 2, %v3912_v49 }
 0x12e   :  { %1071 = vmatpush1.bf16.msra.mxu0 %v3195_v28  ;;  %v3246_v28 = vld [vmem:[#allocation5 + $0x1d0] ss:$8 sps:$4 sm:$0xff]  }
 0x12f   :  { %1072 = vmatprep.subr.bf16.mxu0 %v3200_v29  ;;  %v227_v29 = vsub.s32 3, %v3912_v49 }
 0x132   :  { %1073 = vmatpush1.bf16.msra.mxu0 %v3198_v30  ;;  %v3251_v30 = vld [vmem:[#allocation5 + $0x1e4] ss:$8 sps:$4 sm:$0xff]  }
 0x133   :  { %1074 = vmatprep.subr.bf16.mxu0 %v3203_v31  ;;  %v224_v31 = vrot.slane %v3920_v51, %v223_v27 }
 0x136   :  { %1075 = vmatpush1.bf16.msra.mxu0 %v3201_v32  ;;  %v228_v32 = vrot.slane %v3920_v51, %v227_v29  ;;  %v3270_v51 = vld [vmem:[#allocation7 + $0x38] sm:$0xff]  }
 0x137   :  { %1076 = vmatprep.subr.bf16.mxu0 %v3206_v33  ;;  %v3249_v33 = vld [vmem:[#allocation5 + $0x1e0] ss:$8 sps:$4 sm:$0xff]   ;;  %2987 = vmatpush3.bf16.msra.mxu1 %v3270_v51  ;;  %v3296_v51 = vld [vmem:[#allocation8 + $0x54] ss:$8 sps:$4 sm:$0xff]  }
 0x13a   :  { %1077 = vmatpush1.bf16.msra.mxu0 %v3204_v34  ;;  %v3254_v34 = vld [vmem:[#allocation5 + $0x1f4] ss:$8 sps:$4 sm:$0xff]  }
 0x13b   :  { %1087 = vmatprep.subr.bf16.mxu0 %v3209_v35 }
 0x190   :  { %v594_v55 = vpop.f32.mrb[0].mxu0 }
 0x191   :  { %v595_v56 = vadd.f32 %v594_v55, %v216_v53  ;;  %v596_v57 = vpop.f32.mrb[1].mxu0  ;;  %v3705_v53 = vmov 0.0  }
 0x192   :  { %v597_v58 = vadd.f32 %v596_v57, %v220_v54  ;;  %v598_v59 = vpop.f32.mrb[2].mxu0  ;;  %3005 = vmatprep.subr.bf16.mxu1 %v3705_v53  ;;  %v714_v54 = vld [vmem:[%s4039_s5] sm:$0x3] }
 0x193   :  { %v642_v60 = vmax.f32 %v595_v56, 0.0  ;;  %v599_v61 = vpop.f32.mrb[3].mxu0  ;;  %v719_v55 = vrot.slane %v714_v54, %v3915_v50  ;;  %v723_v56 = vrot.slane %v714_v54, %v3923_v52  ;;  %v3299_v54 = vld [vmem:[#allocation8 + $0x64] ss:$8 sps:$4 sm:$0xff]  }
 0x194   :  { %v643_v62 = vmax.f32 %v597_v58, 0.0 }
 0x195   :  { %v646_v63 = vpack.c.bf16 %v642_v60, %v642_v60 }
 0x196   :  { %v647_v0 = vpack.c.bf16 %v643_v62, %v643_v62 }
 0x198   :  { %1078 = vmatprep.mubr.bf16.mxu0 %v647_v0 }
 0x199   :  { %1079 = vmatmul.mubr.bf16.vlgmr.msra.gmra.mrb[8].mxu0 %v646_v63 }
 0x19a   :  { %1088 = vmatpush1.bf16.msra.mxu0 %v3207_v1 }
 0x19b   :  { %1089 = vmatprep.subr.bf16.mxu0 %v3212_v2  ;;  %v3271_v2 = vld [vmem:[%s4042_s8] sm:$0xff]  }
 0x19e   :  { %1090 = vmatpush1.bf16.msra.mxu0 %v3210_v3 }
 0x19f   :  { %1091 = vmatprep.subr.bf16.mxu0 %v3215_v4  ;;  %v3272_v4 = vld [vmem:[%s4042_s8 + $0x8] sm:$0xff]  }
 0x1a2   :  { %1092 = vmatpush1.bf16.msra.mxu0 %v3213_v5  ;;  %v3273_v5 = vld [vmem:[%s4042_s8 + $0x10] sm:$0xff]  }
 0x1a3   :  { %1093 = vmatprep.subr.bf16.mxu0 %v3218_v6  ;;  %v3274_v6 = vld [vmem:[%s4042_s8 + $0x18] sm:$0xff]  }
 0x1a6   :  { %1094 = vmatpush1.bf16.msra.mxu0 %v3216_v7  ;;  %v3275_v7 = vld [vmem:[%s4042_s8 + $0x20] sm:$0xff]  }
 0x1a7   :  { %1095 = vmatprep.subr.bf16.mxu0 %v3221_v8  ;;  %v3276_v8 = vld [vmem:[%s4042_s8 + $0x28] sm:$0xff]  }
 0x1aa   :  { %1096 = vmatpush1.bf16.msra.mxu0 %v3219_v9  ;;  %v3277_v9 = vld [vmem:[%s4042_s8 + $0x30] sm:$0xff]  }
 0x1ab   :  { %1097 = vmatprep.subr.bf16.mxu0 %v3224_v10  ;;  %v3278_v10 = vld [vmem:[%s4042_s8 + $0x38] sm:$0xff]  }
 0x1ae   :  { %1098 = vmatpush1.bf16.msra.mxu0 %v3222_v11  ;;  %v1425_v11 = vld [vmem:[%s4069_s24] sm:$0xff] }
 0x1af   :  { %1099 = vmatprep.subr.bf16.mxu0 %v3227_v12  ;;  %1427 = vrot.lane.b32.xlu0 %v1425_v11, %s4065_s14  ;;  %v3348_v11 = vld [vmem:[#allocation10 + $0xe8] ss:$16 sps:$4 sm:$0xff]  }
 0x1b2   :  { %1100 = vmatpush1.bf16.msra.mxu0 %v3225_v13  ;;  %v2798_v13 = vld [vmem:[%s4041_s7] ss:$0 sm:$0xff]  ;;  %s3707_s7 = smov 120  }
 0x1b3   :  { %1101 = vmatprep.subr.bf16.mxu0 %v3230_v14 }
 0x1b6   :  { %1102 = vmatpush1.bf16.msra.mxu0 %v3228_v15 }
 0x1b7   :  { %1103 = vmatprep.subr.bf16.mxu0 %v3233_v16 }
 0x1ba   :  { %1104 = vmatpush1.bf16.msra.mxu0 %v3231_v17 }
 0x1bb   :  { %1105 = vmatprep.subr.bf16.mxu0 %v3236_v18 }
 0x1be   :  { %1106 = vmatpush1.bf16.msra.mxu0 %v3234_v19 }
 0x1bf   :  { %1107 = vmatprep.subr.bf16.mxu0 %v3239_v20 }
 0x1c2   :  { %1108 = vmatpush1.bf16.msra.mxu0 %v3237_v21  ;;  %v1437_v21 = vld [vmem:[%s4044_s10] sm:$0xf] }
 0x1c3   :  { %1109 = vmatprep.subr.bf16.mxu0 %v3242_v22  ;;  %v1451_v22 = vsel %vm1449_vm1, %v1437_v21, 0  ;;  %v3378_v21 = vld [vmem:[#allocation10 + $0x188] ss:$16 sps:$4 sm:$0xff]  }
 0x1c6   :  { %1110 = vmatpush1.bf16.msra.mxu0 %v3240_v23  ;;  %v2815_v23 = vld [vmem:[%s4043_s9] ss:$0 sm:$0xff] }
 0x1c7   :  { %1111 = vmatprep.subr.bf16.mxu0 %v3245_v24 }
 0x1ca   :  { %1112 = vmatpush1.bf16.msra.mxu0 %v3243_v25 }
 0x1cb   :  { %1113 = vmatprep.subr.bf16.mxu0 %v3248_v26 }
 0x1ce   :  { %1114 = vmatpush1.bf16.msra.mxu0 %v3246_v28 }
 0x1cf   :  { %1115 = vmatprep.subr.bf16.mxu0 %v3251_v30 }
 0x1d0   :  { %v635_v35 = vpop.f32.mrb[4].mxu0 }
 0x1d1   :  { %v636_v36 = vadd.f32 %v635_v35, %v224_v31  ;;  %v637_v37 = vpop.f32.mrb[5].mxu0 }
 0x1d2   :  { %v638_v38 = vadd.f32 %v637_v37, %v228_v32  ;;  %v639_v39 = vpop.f32.mrb[6].mxu0  ;;  %1116 = vmatpush1.bf16.msra.mxu0 %v3249_v33  ;;  %v3281_v33 = vld [vmem:[#allocation8 + $0x4] ss:$8 sps:$4 sm:$0xff]  }
 0x1d3   :  { %v644_v41 = vmax.f32 %v636_v36, 0.0  ;;  %v640_v42 = vpop.f32.mrb[7].mxu0  ;;  %1117 = vmatprep.subr.bf16.mxu0 %v3254_v34  ;;  %v3279_v39 = vld [vmem:[#allocation8] ss:$8 sps:$4 sm:$0xff]  }
 0x1d4   :  { %v645_v43 = vmax.f32 %v638_v38, 0.0  ;;  %v3282_v42 = vld [vmem:[#allocation8 + $0x10] ss:$8 sps:$4 sm:$0xff]  }
 0x1d5   :  { %v648_v45 = vpack.c.bf16 %v644_v41, %v644_v41  ;;  %v3284_v41 = vld [vmem:[#allocation8 + $0x14] ss:$8 sps:$4 sm:$0xff]  }
 0x1d6   :  { %v649_v44 = vpack.c.bf16 %v645_v43, %v645_v43  ;;  %1118 = vmatpush1.bf16.msra.mxu0 %v3252_v40  ;;  %v3287_v43 = vld [vmem:[#allocation8 + $0x24] ss:$8 sps:$4 sm:$0xff]  }
 0x1d8   :  { %1119 = vmatprep.mubr.bf16.mxu0 %v649_v44  ;;  %v3285_v44 = vld [vmem:[#allocation8 + $0x20] ss:$8 sps:$4 sm:$0xff]  }
 0x1d9   :  { %1120 = vmatmul.mubr.bf16.vlgmr.msra.gmra.mrb[8].mxu0 %v648_v45  ;;  %v3290_v45 = vld [vmem:[#allocation8 + $0x34] ss:$8 sps:$4 sm:$0xff]  }
 0x221   :  { %v1428_v34 = vpop.permute.xlu0 %1427 }
 0x2ac   :  { %v1121_v57 = vpop.f32.mrb[8].mxu0 }
 0x2ad   :  { %v3031_v58 = vadd.f32 %v1121_v57, %v719_v55  ;;  %v1123_v59 = vpop.f32.mrb[9].mxu0  ;;  %v3297_v55 = vld [vmem:[#allocation8 + $0x60] ss:$8 sps:$4 sm:$0xff]   ;;  %v3300_v57 = vld [vmem:[#allocation8 + $0x70] ss:$8 sps:$4 sm:$0xff]  }
 0x2ae   :  { %v3032_v60 = vadd.f32 %v1123_v59, %v723_v56  ;;  %v1125_v61 = vpop.f32.mrb[10].mxu0  ;;  %v3302_v56 = vld [vmem:[#allocation8 + $0x74] ss:$8 sps:$4 sm:$0xff]  }
 0x2af   :  { %v1128_v62 = vmax.f32 %v3031_v58, 0.0  ;;  %v1126_v63 = vpop.f32.mrb[11].mxu0  ;;  %v3708_v58 = vmov 0   ;;  %v3305_v59 = vld [vmem:[#allocation10 + $0x4] ss:$16 sps:$4 sm:$0xff]  }
 0x2b0   :  { %v1129_v0 = vmax.f32 %v3032_v60, 0.0  ;;  %v3306_v60 = vld [vmem:[#allocation10 + $0x8] ss:$16 sps:$4 sm:$0xff]   ;;  %v3308_v61 = vld [vmem:[#allocation10 + $0xc] ss:$16 sps:$4 sm:$0xff]  }
 0x2b1   :  { %v1130_v3 = vpack.c.bf16 %v1128_v62, %v1128_v62  ;;  %v3314_v62 = vld [vmem:[#allocation10 + $0x2c] ss:$16 sps:$4 sm:$0xff]   ;;  %2095 = vmatprep.subr.bf16.mxu0 %v3308_v61  ;;  %v3312_v63 = vld [vmem:[#allocation10 + $0x28] ss:$16 sps:$4 sm:$0xff]   ;;  %v3375_v61 = vld [vmem:[#allocation10 + $0x180] ss:$16 sps:$4 sm:$0xff]  }
 0x2b2   :  { %v1131_v1 = vpack.c.bf16 %v1129_v0, %v1129_v0  ;;  %2096 = vmatpush1.bf16.msra.mxu0 %v3306_v60  ;;  %v3320_v0 = vld [vmem:[#allocation10 + $0x4c] ss:$16 sps:$4 sm:$0xff]   ;;  %v3377_v60 = vld [vmem:[#allocation10 + $0x184] ss:$16 sps:$4 sm:$0xff]  }
 0x2b3   :  { %2097 = vmatprep.subr.bf16.mxu0 %v3314_v62  ;;  %v3383_v62 = vld [vmem:[#allocation10 + $0x1a4] ss:$16 sps:$4 sm:$0xff]  }
 0x2b4   :  { %1299 = vmatprep.mubr.bf16.mxu1 %v1131_v1  ;;  %v3318_v1 = vld [vmem:[#allocation10 + $0x48] ss:$16 sps:$4 sm:$0xff]  }
 0x2b5   :  { %1300 = vmatmul.mubr.bf16.vlgmr.msra.gmra.mrb[0].mxu1 %v1130_v3  ;;  %v3324_v3 = vld [vmem:[#allocation10 + $0x68] ss:$16 sps:$4 sm:$0xff]  }
 0x2b6   :  { %3006 = vmatpush3.bf16.msra.mxu1 %v3271_v2  ;;  %3021 = vmatprep.mubr.msk.bf16.mxu1 %vm3706_vm0, %v3705_v53  ;;  %v3326_v2 = vld [vmem:[#allocation10 + $0x6c] ss:$16 sps:$4 sm:$0xff]  }
 0x2b7   :  { %3007 = vmatprep.subr.bf16.mxu1 %v3705_v53  ;;  %2098 = vmatpush1.bf16.msra.mxu0 %v3312_v63  ;;  %v3381_v63 = vld [vmem:[#allocation10 + $0x1a0] ss:$16 sps:$4 sm:$0xff]  }
 0x2b8   :  { %2099 = vmatprep.subr.bf16.mxu0 %v3320_v0  ;;  %v3389_v0 = vld [vmem:[#allocation10 + $0x1c4] ss:$16 sps:$4 sm:$0xff]  }
 0x2ba   :  { %3008 = vmatpush3.bf16.msra.mxu1 %v3272_v4  ;;  %v3332_v4 = vld [vmem:[#allocation10 + $0x8c] ss:$16 sps:$4 sm:$0xff]  }
 0x2bb   :  { %3009 = vmatprep.subr.bf16.mxu1 %v3705_v53  ;;  %2100 = vmatpush1.bf16.msra.mxu0 %v3318_v1  ;;  %v3392_v1 = vld [vmem:[#allocation10 + $0x1cc] ss:$16 sps:$4 sm:$0xff]  }
 0x2bc   :  { %2101 = vmatprep.subr.bf16.mxu0 %v3326_v2  ;;  %v3387_v2 = vld [vmem:[#allocation10 + $0x1c0] ss:$16 sps:$4 sm:$0xff]  }
 0x2be   :  { %3010 = vmatpush3.bf16.msra.mxu1 %v3273_v5  ;;  %v3330_v5 = vld [vmem:[#allocation10 + $0x88] ss:$16 sps:$4 sm:$0xff]  }
 0x2bf   :  { %3011 = vmatprep.subr.bf16.mxu1 %v3705_v53  ;;  %2102 = vmatpush1.bf16.msra.mxu0 %v3324_v3  ;;  %v3390_v3 = vld [vmem:[#allocation10 + $0x1c8] ss:$16 sps:$4 sm:$0xff]  }
 0x2c0   :  { %2103 = vmatprep.subr.bf16.mxu0 %v3332_v4  ;;  %v3395_v4 = vld [vmem:[#allocation10 + $0x1e4] ss:$16 sps:$4 sm:$0xff]  }
 0x2c2   :  { %3012 = vmatpush3.bf16.msra.mxu1 %v3274_v6  ;;  %v3338_v6 = vld [vmem:[#allocation10 + $0xac] ss:$16 sps:$4 sm:$0xff]  }
 0x2c3   :  { %3013 = vmatprep.subr.bf16.mxu1 %v3705_v53  ;;  %2104 = vmatpush1.bf16.msra.mxu0 %v3330_v5  ;;  %v3398_v5 = vld [vmem:[#allocation10 + $0x1ec] ss:$16 sps:$4 sm:$0xff]  }
 0x2c4   :  { %2105 = vmatprep.subr.bf16.mxu0 %v3338_v6  ;;  %v3393_v6 = vld [vmem:[#allocation10 + $0x1e0] ss:$16 sps:$4 sm:$0xff]  }
 0x2c6   :  { %3014 = vmatpush3.bf16.msra.mxu1 %v3275_v7  ;;  %v3336_v7 = vld [vmem:[#allocation10 + $0xa8] ss:$16 sps:$4 sm:$0xff]  }
 0x2c7   :  { %3015 = vmatprep.subr.bf16.mxu1 %v3705_v53  ;;  %2106 = vmatpush1.bf16.msra.mxu0 %v3336_v7  ;;  %v3396_v7 = vld [vmem:[#allocation10 + $0x1e8] ss:$16 sps:$4 sm:$0xff]  }
 0x2ca   :  { %3016 = vmatpush3.bf16.msra.mxu1 %v3276_v8  ;;  %v3344_v8 = vld [vmem:[#allocation10 + $0xcc] ss:$16 sps:$4 sm:$0xff]  }
 0x2cb   :  { %3017 = vmatprep.subr.bf16.mxu1 %v3705_v53  ;;  %2107 = vmatprep.subr.bf16.mxu0 %v3344_v8  ;;  %v3401_v8 = vld [vmem:[#allocation11 + $0x4] ss:$8 sps:$4 sm:$0xff]  }
 0x2ce   :  { %3018 = vmatpush3.bf16.msra.mxu1 %v3277_v9  ;;  %v3342_v9 = vld [vmem:[#allocation10 + $0xc8] ss:$16 sps:$4 sm:$0xff]  }
 0x2cf   :  { %3019 = vmatprep.subr.bf16.mxu1 %v3705_v53  ;;  %2108 = vmatpush1.bf16.msra.mxu0 %v3342_v9  ;;  %v1511_v9 = vld [vmem:[%s4047_s13] sm:$0x3] }
 0x2d2   :  { %3020 = vmatpush3.bf16.msra.mxu1 %v3278_v10  ;;  %v3350_v10 = vld [vmem:[#allocation10 + $0xec] ss:$16 sps:$4 sm:$0xff]  }
 0x2d3   :  { %3025 = vmatprep.subr.bf16.mxu1 %v3705_v53  ;;  %2109 = vmatprep.subr.bf16.mxu0 %v3350_v10  ;;  %v1516_v10 = vrot.slane %v1511_v9, %v3915_v50 }
 0x2d4   :  { %2110 = vmatpush1.bf16.msra.mxu0 %v3348_v11  ;;  %v1520_v11 = vrot.slane %v1511_v9, %v3923_v52 }
 0x388   :  { %v2988_v12 = vpop.f32.mrb[0].mxu1 }
 0x389   :  { %v2989_v14 = vpop.f32.mrb[1].mxu1 }
 0x38a   :  { %v2990_v15 = vadd.f32 %v2989_v14, %v2988_v12  ;;  %v2991_v16 = vpop.f32.mrb[2].mxu1  ;;  %v3356_v12 = vld [vmem:[#allocation10 + $0x10c] ss:$16 sps:$4 sm:$0xff]  }
 0x38b   :  { %v2992_v17 = vpop.f32.mrb[3].mxu1  ;;  %2111 = vmatprep.subr.bf16.mxu0 %v3356_v12  ;;  %v3362_v14 = vld [vmem:[#allocation10 + $0x12c] ss:$16 sps:$4 sm:$0xff]  }
 0x38c   :  { %v1302_v18 = vadd.f32 %v2990_v15, %v2798_v13  ;;  %v3354_v13 = vld [vmem:[#allocation10 + $0x108] ss:$16 sps:$4 sm:$0xff]   ;;  %v3368_v16 = vld [vmem:[#allocation10 + $0x14c] ss:$16 sps:$4 sm:$0xff]  }
 0x38d   :  { %2112 = vmatpush1.bf16.msra.mxu0 %v3354_v13  ;;  %v3360_v15 = vld [vmem:[#allocation10 + $0x128] ss:$16 sps:$4 sm:$0xff]  }
 0x38e   :  { %v1307_v19 = vmax.f32 %v1302_v18, 0.0  ;;  %2113 = vmatprep.subr.bf16.mxu0 %v3362_v14  ;;  %v3366_v17 = vld [vmem:[#allocation10 + $0x148] ss:$16 sps:$4 sm:$0xff]   ;;  %v3374_v18 = vld [vmem:[#allocation10 + $0x16c] ss:$16 sps:$4 sm:$0xff]  }
 0x390   :  { %v1308_v20 = vpack.c.bf16 %v1307_v19, %v1307_v19  ;;  %v3372_v19 = vld [vmem:[#allocation10 + $0x168] ss:$16 sps:$4 sm:$0xff]  }
 0x391   :  { %2114 = vmatpush1.bf16.msra.mxu0 %v3360_v15 }
 0x392   :  { %3022 = vmatmul.mubr.bf16.vlgmr.msra.gmra.mrb[4].mxu1 %v1308_v20  ;;  %2115 = vmatprep.subr.bf16.mxu0 %v3368_v16  ;;  %v3380_v20 = vld [vmem:[#allocation10 + $0x18c] ss:$16 sps:$4 sm:$0xff]  }
 0x393   :  { %3027 = vmatprep.mubr.msk.bf16.mxu1 %vm3706_vm0, %v3705_v53  ;;  %3026 = vmatpush3.bf16.msra.mxu1 %v1451_v22  ;;  %v3294_v53 = vld [vmem:[#allocation8 + $0x50] ss:$8 sps:$4 sm:$0xff]   ;;  %v3386_v22 = vld [vmem:[#allocation10 + $0x1ac] ss:$16 sps:$4 sm:$0xff]  }
 0x394   :  { %1603 = vmatprep.subr.bf16.mxu1 %v3281_v33  ;;  %v3303_v33 = vld [vmem:[#allocation10] ss:$16 sps:$4 sm:$0xff]  }
 0x395   :  { %2116 = vmatpush1.bf16.msra.mxu0 %v3366_v17 }
 0x396   :  { %2117 = vmatprep.subr.bf16.mxu0 %v3374_v18 }
 0x399   :  { %2118 = vmatpush1.bf16.msra.mxu0 %v3372_v19 }
 0x39a   :  { %2119 = vmatprep.subr.bf16.mxu0 %v3380_v20 }
 0x39d   :  { %2120 = vmatpush1.bf16.msra.mxu0 %v3378_v21  ;;  %v3399_v21 = vld [vmem:[#allocation11] ss:$8 sps:$4 sm:$0xff]  }
 0x39e   :  { %2121 = vmatprep.subr.bf16.mxu0 %v3386_v22 }
 0x465   :  { %v1414_v24 = vpop.f32.mrb[4].mxu1 }
 0x466   :  { %v1415_v25 = vadd.f32 %v2815_v23, %v1414_v24  ;;  %v3023_v26 = vpop.f32.mrb[5].mxu1  ;;  %v3384_v23 = vld [vmem:[#allocation10 + $0x1a8] ss:$16 sps:$4 sm:$0xff]   ;;  %v2824_v24 = vld [vmem:[%s4045_s11] ss:$0 sm:$0xff] }
 0x467   :  { %v1417_v28 = vpop.f32.mrb[6].mxu1  ;;  %2122 = vmatpush1.bf16.msra.mxu0 %v3384_v23  ;;  %v3404_v23 = vld [vmem:[#allocation11 + $0x14] ss:$8 sps:$4 sm:$0xff]  }
 0x468   :  { %v1422_v30 = vmul.f32 0.5, %v1415_v25  ;;  %v3024_v31 = vpop.f32.mrb[7].mxu1  ;;  %1421 = vst.msk [vmem:[#allocation13] sm:$0xff] %vm1420_vm2, %v1415_v25  ;;  %2123 = vmatprep.subr.bf16.mxu0 %v3392_v1 }
 0x46a   :  { %v1423_v32 = vmul.f32 1.442695, %v1422_v30 }
 0x46b   :  { %2124 = vmatpush1.bf16.msra.mxu0 %v3390_v3 }
 0x46c   :  { %3495 = vpow2.f32 %v1423_v32  ;;  %2125 = vmatprep.subr.bf16.mxu0 %v3398_v5 }
 0x46f   :  { %2126 = vmatpush1.bf16.msra.mxu0 %v3396_v7 }
 0x476   :  { %v3496_v35 = vpop.eup %3495 }
 0x477   :  { %v1430_v36 = vmul.f32 %v3496_v35, %v1428_v34  ;;  %v3311_v35 = vld [vmem:[#allocation10 + $0x24] ss:$16 sps:$4 sm:$0xff]  }
 0x479   :  { %1432 = vrot.lane.b32.xlu0 %v1430_v36, %s3707_s7  ;;  %v3309_v36 = vld [vmem:[#allocation10 + $0x20] ss:$16 sps:$4 sm:$0xff]  }
 0x4eb   :  { %v1433_v37 = vpop.permute.xlu0 %1432 }
 0x4ec   :  { %v1435_v38 = vadd.f32 %v1433_v37, %v1415_v25  ;;  %v3317_v37 = vld [vmem:[#allocation10 + $0x44] ss:$16 sps:$4 sm:$0xff]  }
 0x4ee   :  { %v1436_v40 = vpack.c.bf16 %v1435_v38, %v1435_v38  ;;  %v3315_v38 = vld [vmem:[#allocation10 + $0x40] ss:$16 sps:$4 sm:$0xff]  }
 0x4f0   :  { %3028 = vmatmul.mubr.msk.bf16.vlgmr.msra.gmra.mrb[8].mxu1 %vm1445_vm3, %v1436_v40  ;;  %v3321_v40 = vld [vmem:[#allocation10 + $0x60] ss:$16 sps:$4 sm:$0xff]  }
 0x4f1   :  { %1604 = vmatpush1.bf16.msra.mxu1 %v3279_v39  ;;  %1635 = vmatprep.mubr.bf16.mxu1 %v3708_v58  ;;  %v3323_v39 = vld [vmem:[#allocation10 + $0x64] ss:$16 sps:$4 sm:$0xff]  }
 0x4f2   :  { %1605 = vmatprep.subr.bf16.mxu1 %v3284_v41  ;;  %v3329_v41 = vld [vmem:[#allocation10 + $0x84] ss:$16 sps:$4 sm:$0xff]  }
 0x4f3   :  { %v3371_v58 = vld [vmem:[#allocation10 + $0x164] ss:$16 sps:$4 sm:$0xff]  }
 0x4f5   :  { %1606 = vmatpush1.bf16.msra.mxu1 %v3282_v42  ;;  %v3327_v42 = vld [vmem:[#allocation10 + $0x80] ss:$16 sps:$4 sm:$0xff]  }
 0x4f6   :  { %1607 = vmatprep.subr.bf16.mxu1 %v3287_v43  ;;  %v3335_v43 = vld [vmem:[#allocation10 + $0xa4] ss:$16 sps:$4 sm:$0xff]  }
 0x4f9   :  { %1608 = vmatpush1.bf16.msra.mxu1 %v3285_v44  ;;  %v3333_v44 = vld [vmem:[#allocation10 + $0xa0] ss:$16 sps:$4 sm:$0xff]  }
 0x4fa   :  { %1609 = vmatprep.subr.bf16.mxu1 %v3290_v45  ;;  %v3341_v45 = vld [vmem:[#allocation10 + $0xc4] ss:$16 sps:$4 sm:$0xff]  }
 0x4fd   :  { %1610 = vmatpush1.bf16.msra.mxu1 %v3288_v46  ;;  %v3339_v46 = vld [vmem:[#allocation10 + $0xc0] ss:$16 sps:$4 sm:$0xff]  }
 0x4fe   :  { %1611 = vmatprep.subr.bf16.mxu1 %v3293_v47  ;;  %v3347_v47 = vld [vmem:[#allocation10 + $0xe4] ss:$16 sps:$4 sm:$0xff]  }
 0x501   :  { %1612 = vmatpush1.bf16.msra.mxu1 %v3291_v48  ;;  %v3345_v48 = vld [vmem:[#allocation10 + $0xe0] ss:$16 sps:$4 sm:$0xff]  }
 0x502   :  { %1613 = vmatprep.subr.bf16.mxu1 %v3296_v51  ;;  %v3353_v51 = vld [vmem:[#allocation10 + $0x104] ss:$16 sps:$4 sm:$0xff]  }
 0x505   :  { %1614 = vmatpush1.bf16.msra.mxu1 %v3294_v53  ;;  %v3351_v53 = vld [vmem:[#allocation10 + $0x100] ss:$16 sps:$4 sm:$0xff]  }
 0x506   :  { %1615 = vmatprep.subr.bf16.mxu1 %v3299_v54  ;;  %v3359_v54 = vld [vmem:[#allocation10 + $0x124] ss:$16 sps:$4 sm:$0xff]  }
 0x509   :  { %1616 = vmatpush1.bf16.msra.mxu1 %v3297_v55  ;;  %v3357_v55 = vld [vmem:[#allocation10 + $0x120] ss:$16 sps:$4 sm:$0xff]  }
 0x50a   :  { %1617 = vmatprep.subr.bf16.mxu1 %v3302_v56  ;;  %v3365_v56 = vld [vmem:[#allocation10 + $0x144] ss:$16 sps:$4 sm:$0xff]  }
 0x50d   :  { %1618 = vmatpush1.bf16.msra.mxu1 %v3300_v57  ;;  %v3363_v57 = vld [vmem:[#allocation10 + $0x140] ss:$16 sps:$4 sm:$0xff]  }
 0x50e   :  { %2054 = vmatprep.subr.bf16.mxu1 %v3305_v59  ;;  %v3369_v59 = vld [vmem:[#allocation10 + $0x160] ss:$16 sps:$4 sm:$0xff]  }
 0x5c3   :  { %v1487_v25 = vpop.f32.mrb[8].mxu1 }
 0x5c4   :  { %v1488_v26 = vadd.f32 %v2824_v24, %v1487_v25  ;;  %v3029_v28 = vpop.f32.mrb[9].mxu1  ;;  %v3402_v24 = vld [vmem:[#allocation11 + $0x10] ss:$8 sps:$4 sm:$0xff]   ;;  %v3407_v25 = vld [vmem:[#allocation11 + $0x24] ss:$8 sps:$4 sm:$0xff]  }
 0x5c5   :  { %v1490_v30 = vpop.f32.mrb[10].mxu1  ;;  %v3410_v28 = vld [vmem:[#allocation11 + $0x34] ss:$8 sps:$4 sm:$0xff]  }
 0x5c6   :  { %v1493_v31 = vmax.f32 %v1488_v26, 0.0  ;;  %v3030_v32 = vpop.f32.mrb[11].mxu1  ;;  %v3405_v26 = vld [vmem:[#allocation11 + $0x20] ss:$8 sps:$4 sm:$0xff]   ;;  %v3408_v30 = vld [vmem:[#allocation11 + $0x30] ss:$8 sps:$4 sm:$0xff]  }
 0x5c7   :  { %v3411_v32 = vld [vmem:[#allocation11 + $0x40] ss:$8 sps:$4 sm:$0xff]  }
 0x5c8   :  { %v1494_v34 = vpack.c.bf16 %v1493_v31, %v1493_v31  ;;  %v3413_v31 = vld [vmem:[#allocation11 + $0x44] ss:$8 sps:$4 sm:$0xff]  }
 0x5ca   :  { %1636 = vmatmul.mubr.bf16.vlgmr.msra.gmra.mrb[12].mxu1 %v1494_v34  ;;  %v3414_v34 = vld [vmem:[#allocation11 + $0x50] ss:$8 sps:$4 sm:$0xff]  }
 0x5cb   :  { %2055 = vmatpush1.bf16.msra.mxu1 %v3303_v33  ;;  %v3416_v33 = vld [vmem:[#allocation11 + $0x54] ss:$8 sps:$4 sm:$0xff]  }
 0x5cc   :  { %2056 = vmatprep.subr.bf16.mxu1 %v3311_v35  ;;  %v3419_v35 = vld [vmem:[#allocation11 + $0x64] ss:$8 sps:$4 sm:$0xff]  }
 0x5cf   :  { %2057 = vmatpush1.bf16.msra.mxu1 %v3309_v36  ;;  %v3417_v36 = vld [vmem:[#allocation11 + $0x60] ss:$8 sps:$4 sm:$0xff]  }
 0x5d0   :  { %2058 = vmatprep.subr.bf16.mxu1 %v3317_v37  ;;  %v3422_v37 = vld [vmem:[#allocation11 + $0x74] ss:$8 sps:$4 sm:$0xff]  }
 0x5d3   :  { %2059 = vmatpush1.bf16.msra.mxu1 %v3315_v38  ;;  %v3420_v38 = vld [vmem:[#allocation11 + $0x70] ss:$8 sps:$4 sm:$0xff]  }
 0x5d4   :  { %2060 = vmatprep.subr.bf16.mxu1 %v3323_v39  ;;  %v3425_v39 = vld [vmem:[#allocation11 + $0x84] ss:$8 sps:$4 sm:$0xff]  }
 0x5d7   :  { %2061 = vmatpush1.bf16.msra.mxu1 %v3321_v40  ;;  %v3423_v40 = vld [vmem:[#allocation11 + $0x80] ss:$8 sps:$4 sm:$0xff]  }
 0x5d8   :  { %2062 = vmatprep.subr.bf16.mxu1 %v3329_v41  ;;  %v3428_v41 = vld [vmem:[#allocation11 + $0x94] ss:$8 sps:$4 sm:$0xff]  }
 0x5db   :  { %2063 = vmatpush1.bf16.msra.mxu1 %v3327_v42  ;;  %v3426_v42 = vld [vmem:[#allocation11 + $0x90] ss:$8 sps:$4 sm:$0xff]  }
 0x5dc   :  { %2064 = vmatprep.subr.bf16.mxu1 %v3335_v43  ;;  %v3431_v43 = vld [vmem:[#allocation11 + $0xa4] ss:$8 sps:$4 sm:$0xff]  }
 0x5df   :  { %2065 = vmatpush1.bf16.msra.mxu1 %v3333_v44  ;;  %v3429_v44 = vld [vmem:[#allocation11 + $0xa0] ss:$8 sps:$4 sm:$0xff]  }
 0x5e0   :  { %2066 = vmatprep.subr.bf16.mxu1 %v3341_v45  ;;  %v3434_v45 = vld [vmem:[#allocation11 + $0xb4] ss:$8 sps:$4 sm:$0xff]  }
 0x5e3   :  { %2067 = vmatpush1.bf16.msra.mxu1 %v3339_v46  ;;  %v3432_v46 = vld [vmem:[#allocation11 + $0xb0] ss:$8 sps:$4 sm:$0xff]  }
 0x5e4   :  { %2068 = vmatprep.subr.bf16.mxu1 %v3347_v47  ;;  %v3437_v47 = vld [vmem:[#allocation11 + $0xc4] ss:$8 sps:$4 sm:$0xff]  }
 0x5e7   :  { %2069 = vmatpush1.bf16.msra.mxu1 %v3345_v48  ;;  %v3435_v48 = vld [vmem:[#allocation11 + $0xc0] ss:$8 sps:$4 sm:$0xff]  }
 0x5e8   :  { %2070 = vmatprep.subr.bf16.mxu1 %v3353_v51  ;;  %v3440_v51 = vld [vmem:[#allocation11 + $0xd4] ss:$8 sps:$4 sm:$0xff]  }
 0x5eb   :  { %2071 = vmatpush1.bf16.msra.mxu1 %v3351_v53  ;;  %v3438_v53 = vld [vmem:[#allocation11 + $0xd0] ss:$8 sps:$4 sm:$0xff]  }
 0x5ec   :  { %2072 = vmatprep.subr.bf16.mxu1 %v3359_v54  ;;  %v3443_v54 = vld [vmem:[#allocation11 + $0xe4] ss:$8 sps:$4 sm:$0xff]  }
 0x5ef   :  { %2073 = vmatpush1.bf16.msra.mxu1 %v3357_v55  ;;  %v3441_v55 = vld [vmem:[#allocation11 + $0xe0] ss:$8 sps:$4 sm:$0xff]  }
 0x5f0   :  { %2074 = vmatprep.subr.bf16.mxu1 %v3365_v56  ;;  %v3446_v56 = vld [vmem:[#allocation11 + $0xf4] ss:$8 sps:$4 sm:$0xff]  }
 0x5f3   :  { %2075 = vmatpush1.bf16.msra.mxu1 %v3363_v57  ;;  %v3444_v57 = vld [vmem:[#allocation11 + $0xf0] ss:$8 sps:$4 sm:$0xff]  }
 0x5f4   :  { %2076 = vmatprep.subr.bf16.mxu1 %v3371_v58  ;;  %v3449_v58 = vld [vmem:[#allocation11 + $0x104] ss:$8 sps:$4 sm:$0xff]  }
 0x5f7   :  { %2077 = vmatpush1.bf16.msra.mxu1 %v3369_v59  ;;  %v3990_v59 = vld [vmem:[%s4049_s15] sm:$0xf]  ;;  %s3709_s15 = smov [#allocation13]  }
 0x5f8   :  { %2078 = vmatprep.subr.bf16.mxu1 %v3377_v60  ;;  %v1717_v60 = vrot.slane %v3990_v59, %v3915_v50  ;;  %s2642_s3 = sshll.u32 %s3709_s15, 4  ;;  %s2643_s3 = int_to_ptr.vmem [resolvable:$true] %s2642_s3 }
 0x5f9   :  { %s3637_s26 = scalar_lea.vmem %s2643_s3, 128  ;;  %p3642_p7 = scmp.lt.s32.totalorder %s2643_s3, %s2643_s3 }
 0x5fa   :  { %p3638_p6 = scmp.ne.s32.totalorder %s2643_s3, %s3637_s26  ;;  %p3643_p8 = scmp.lt.s32.totalorder %s3637_s26, %s3637_s26 }
 0x5fb   :  { %2079 = vmatpush1.bf16.msra.mxu1 %v3375_v61  ;;  %v1721_v61 = vrot.slane %v3990_v59, %v3923_v52 }
 0x5fc   :  { %2080 = vmatprep.subr.bf16.mxu1 %v3383_v62  ;;  %v1729_v62 = vrot.slane %v3990_v59, %v227_v29  ;;  %p3644_p9 = por %p3643_p8, %p3642_p7 }
 0x5fe   :  { %p3645_p10 = pnand %p3644_p9, %p3638_p6 }
 0x5ff   :  { %2081 = vmatpush1.bf16.msra.mxu1 %v3381_v63 }
 0x600   :  { %2082 = vmatprep.subr.bf16.mxu1 %v3389_v0 }
 0x603   :  { %2083 = vmatpush1.bf16.msra.mxu1 %v3387_v2 }
 0x604   :  { %2084 = vmatprep.subr.bf16.mxu1 %v3395_v4 }
 0x607   :  { %2085 = vmatpush1.bf16.msra.mxu1 %v3393_v6 }
 0x608   :  { %2540 = vmatprep.subr.bf16.mxu1 %v3401_v8 }
 0x69d   :  { %v1637_v12 = vpop.f32.mrb[12].mxu1 }
 0x69e   :  { %v1638_v13 = vadd.f32 %v1637_v12, %v1516_v10  ;;  %v1639_v14 = vpop.f32.mrb[13].mxu1 }
 0x69f   :  { %v1640_v15 = vadd.f32 %v1639_v14, %v1520_v11  ;;  %v1641_v16 = vpop.f32.mrb[14].mxu1  ;;  %v3447_v14 = vld [vmem:[#allocation11 + $0x100] ss:$8 sps:$4 sm:$0xff]  }
 0x6a0   :  { %v1644_v17 = vmax.f32 %v1638_v13, 0.0  ;;  %v1642_v18 = vpop.f32.mrb[15].mxu1  ;;  %v3452_v16 = vld [vmem:[#allocation11 + $0x114] ss:$8 sps:$4 sm:$0xff]  }
 0x6a1   :  { %v1645_v19 = vmax.f32 %v1640_v15, 0.0  ;;  %v3455_v18 = vld [vmem:[#allocation11 + $0x124] ss:$8 sps:$4 sm:$0xff]  }
 0x6a2   :  { %v1646_v22 = vpack.c.bf16 %v1644_v17, %v1644_v17  ;;  %v3450_v17 = vld [vmem:[#allocation11 + $0x110] ss:$8 sps:$4 sm:$0xff]  }
 0x6a3   :  { %v1647_v20 = vpack.c.bf16 %v1645_v19, %v1645_v19  ;;  %v3453_v19 = vld [vmem:[#allocation11 + $0x120] ss:$8 sps:$4 sm:$0xff]  }
 0x6a5   :  { %2086 = vmatprep.mubr.bf16.mxu1 %v1647_v20  ;;  %2127 = vmatprep.mubr.bf16.mxu0 %v1647_v20  ;;  %v3458_v20 = vld [vmem:[#allocation11 + $0x134] ss:$8 sps:$4 sm:$0xff]  }
 0x6a6   :  { %2087 = vmatmul.mubr.bf16.vlgmr.msra.gmra.mrb[16].mxu1 %v1646_v22  ;;  %2128 = vmatmul.mubr.bf16.vlgmr.msra.gmra.mrb[12].mxu0 %v1646_v22  ;;  %v3461_v22 = vld [vmem:[#allocation11 + $0x144] ss:$8 sps:$4 sm:$0xff]  }
 0x6a7   :  { %2541 = vmatpush1.bf16.msra.mxu1 %v3399_v21  ;;  %v3456_v21 = vld [vmem:[#allocation11 + $0x130] ss:$8 sps:$4 sm:$0xff]  }
 0x6a8   :  { %2542 = vmatprep.subr.bf16.mxu1 %v3404_v23  ;;  %v3459_v23 = vld [vmem:[#allocation11 + $0x140] ss:$8 sps:$4 sm:$0xff]  }
 0x6ab   :  { %2543 = vmatpush1.bf16.msra.mxu1 %v3402_v24  ;;  %v3464_v24 = vld [vmem:[#allocation11 + $0x154] ss:$8 sps:$4 sm:$0xff]  }
 0x6ac   :  { %2544 = vmatprep.subr.bf16.mxu1 %v3407_v25  ;;  %v3462_v25 = vld [vmem:[#allocation11 + $0x150] ss:$8 sps:$4 sm:$0xff]  }
 0x6af   :  { %2545 = vmatpush1.bf16.msra.mxu1 %v3405_v26  ;;  %v3467_v26 = vld [vmem:[#allocation11 + $0x164] ss:$8 sps:$4 sm:$0xff]  }
 0x6b0   :  { %2546 = vmatprep.subr.bf16.mxu1 %v3410_v28  ;;  %v3465_v28 = vld [vmem:[#allocation11 + $0x160] ss:$8 sps:$4 sm:$0xff]  }
 0x6b3   :  { %2547 = vmatpush1.bf16.msra.mxu1 %v3408_v30  ;;  %v3470_v30 = vld [vmem:[#allocation11 + $0x174] ss:$8 sps:$4 sm:$0xff]  }
 0x6b4   :  { %2548 = vmatprep.subr.bf16.mxu1 %v3413_v31  ;;  %v3468_v31 = vld [vmem:[#allocation11 + $0x170] ss:$8 sps:$4 sm:$0xff]  }
 0x6b7   :  { %2549 = vmatpush1.bf16.msra.mxu1 %v3411_v32  ;;  %v3473_v32 = vld [vmem:[#allocation11 + $0x184] ss:$8 sps:$4 sm:$0xff]  }
 0x6b8   :  { %2550 = vmatprep.subr.bf16.mxu1 %v3416_v33  ;;  %v3471_v33 = vld [vmem:[#allocation11 + $0x180] ss:$8 sps:$4 sm:$0xff]  }
 0x6bb   :  { %2551 = vmatpush1.bf16.msra.mxu1 %v3414_v34  ;;  %v3476_v34 = vld [vmem:[#allocation11 + $0x194] ss:$8 sps:$4 sm:$0xff]  }
 0x6bc   :  { %2552 = vmatprep.subr.bf16.mxu1 %v3419_v35  ;;  %v3474_v35 = vld [vmem:[#allocation11 + $0x190] ss:$8 sps:$4 sm:$0xff]  }
 0x6bf   :  { %2553 = vmatpush1.bf16.msra.mxu1 %v3417_v36  ;;  %v3479_v36 = vld [vmem:[#allocation11 + $0x1a4] ss:$8 sps:$4 sm:$0xff]  }
 0x6c0   :  { %2554 = vmatprep.subr.bf16.mxu1 %v3422_v37  ;;  %v3477_v37 = vld [vmem:[#allocation11 + $0x1a0] ss:$8 sps:$4 sm:$0xff]  }
 0x6c3   :  { %2555 = vmatpush1.bf16.msra.mxu1 %v3420_v38  ;;  %v3482_v38 = vld [vmem:[#allocation11 + $0x1b4] ss:$8 sps:$4 sm:$0xff]  }
 0x6c4   :  { %2556 = vmatprep.subr.bf16.mxu1 %v3425_v39  ;;  %v3480_v39 = vld [vmem:[#allocation11 + $0x1b0] ss:$8 sps:$4 sm:$0xff]  }
 0x6c7   :  { %2557 = vmatpush1.bf16.msra.mxu1 %v3423_v40  ;;  %v3485_v40 = vld [vmem:[#allocation11 + $0x1c4] ss:$8 sps:$4 sm:$0xff]  }
 0x6c8   :  { %2558 = vmatprep.subr.bf16.mxu1 %v3428_v41  ;;  %v3483_v41 = vld [vmem:[#allocation11 + $0x1c0] ss:$8 sps:$4 sm:$0xff]  }
 0x6cb   :  { %2559 = vmatpush1.bf16.msra.mxu1 %v3426_v42  ;;  %v3488_v42 = vld [vmem:[#allocation11 + $0x1d4] ss:$8 sps:$4 sm:$0xff]  }
 0x6cc   :  { %2560 = vmatprep.subr.bf16.mxu1 %v3431_v43  ;;  %v3486_v43 = vld [vmem:[#allocation11 + $0x1d0] ss:$8 sps:$4 sm:$0xff]  }
 0x6cf   :  { %2561 = vmatpush1.bf16.msra.mxu1 %v3429_v44  ;;  %v1725_v44 = vrot.slane %v3990_v59, %v223_v27 }
 0x6d0   :  { %2562 = vmatprep.subr.bf16.mxu1 %v3434_v45  ;;  %v3491_v45 = vld [vmem:[#allocation11 + $0x1e4] ss:$8 sps:$4 sm:$0xff]  }
 0x6d3   :  { %2563 = vmatpush1.bf16.msra.mxu1 %v3432_v46  ;;  %v3489_v46 = vld [vmem:[#allocation11 + $0x1e0] ss:$8 sps:$4 sm:$0xff]  }
 0x6d4   :  { %2564 = vmatprep.subr.bf16.mxu1 %v3437_v47 }
 0x6d7   :  { %2565 = vmatpush1.bf16.msra.mxu1 %v3435_v48  ;;  %v3494_v48 = vld [vmem:[#allocation11 + $0x1f4] ss:$8 sps:$4 sm:$0xff]  }
 0x6d8   :  { %2566 = vmatprep.subr.bf16.mxu1 %v3440_v51  ;;  %v3492_v51 = vld [vmem:[#allocation11 + $0x1f0] ss:$8 sps:$4 sm:$0xff]  }
 0x6db   :  { %2567 = vmatpush1.bf16.msra.mxu1 %v3438_v53 }
 0x6dc   :  { %2568 = vmatprep.subr.bf16.mxu1 %v3443_v54 }
 0x6df   :  { %2569 = vmatpush1.bf16.msra.mxu1 %v3441_v55 }
 0x6e0   :  { %2570 = vmatprep.subr.bf16.mxu1 %v3446_v56 }
 0x6e3   :  { %2571 = vmatpush1.bf16.msra.mxu1 %v3444_v57 }
 0x6e4   :  { %2581 = vmatprep.subr.bf16.mxu1 %v3449_v58 }
 0x779   :  { %v2088_v63 = vpop.f32.mrb[16].mxu1  ;;  %v3999_v0 = vpop.f32.mrb[12].mxu0 }
 0x77a   :  { %v2089_v1 = vadd.f32 %v2088_v63, %v1717_v60  ;;  %v2090_v2 = vpop.f32.mrb[17].mxu1  ;;  %v2131_v3 = vpop.f32.mrb[13].mxu0  ;;  %v2130_v47 = vadd.f32 %v3999_v0, %v1725_v44 }
 0x77b   :  { %v2091_v4 = vadd.f32 %v2090_v2, %v1721_v61  ;;  %v2132_v5 = vadd.f32 %v2131_v3, %v1729_v62  ;;  %v2092_v6 = vpop.f32.mrb[18].mxu1  ;;  %v2133_v7 = vpop.f32.mrb[14].mxu0 }
 0x77c   :  { %v2136_v8 = vmax.f32 %v2089_v1, 0.0  ;;  %v2093_v9 = vpop.f32.mrb[19].mxu1  ;;  %v2134_v10 = vpop.f32.mrb[15].mxu0  ;;  %v2138_v53 = vmax.f32 %v2130_v47, 0.0 }
 0x77d   :  { %v2137_v11 = vmax.f32 %v2091_v4, 0.0  ;;  %v2139_v12 = vmax.f32 %v2132_v5, 0.0 }
 0x77e   :  { %v2140_v15 = vpack.c.bf16 %v2136_v8, %v2136_v8  ;;  %v2142_v54 = vpack.c.bf16 %v2138_v53, %v2138_v53 }
 0x77f   :  { %v2141_v13 = vpack.c.bf16 %v2137_v11, %v2137_v11  ;;  %v2143_v29 = vpack.c.bf16 %v2139_v12, %v2139_v12 }
 0x781   :  { %2572 = vmatprep.mubr.bf16.mxu1 %v2141_v13 }
 0x782   :  { %2573 = vmatmul.mubr.bf16.vlgmr.msra.gmra.mrb[20].mxu1 %v2140_v15 }
 0x783   :  { %2582 = vmatpush1.bf16.msra.mxu1 %v3447_v14  ;;  %2613 = vmatprep.mubr.bf16.mxu1 %v2143_v29 }
 0x784   :  { %2583 = vmatprep.subr.bf16.mxu1 %v3452_v16 }
 0x787   :  { %2584 = vmatpush1.bf16.msra.mxu1 %v3450_v17 }
 0x788   :  { %2585 = vmatprep.subr.bf16.mxu1 %v3455_v18 }
 0x78b   :  { %2586 = vmatpush1.bf16.msra.mxu1 %v3453_v19 }
 0x78c   :  { %2587 = vmatprep.subr.bf16.mxu1 %v3458_v20 }
 0x78f   :  { %2588 = vmatpush1.bf16.msra.mxu1 %v3456_v21 }
 0x790   :  { %2589 = vmatprep.subr.bf16.mxu1 %v3461_v22 }
 0x793   :  { %2590 = vmatpush1.bf16.msra.mxu1 %v3459_v23 }
 0x794   :  { %2591 = vmatprep.subr.bf16.mxu1 %v3464_v24 }
 0x797   :  { %2592 = vmatpush1.bf16.msra.mxu1 %v3462_v25 }
 0x798   :  { %2593 = vmatprep.subr.bf16.mxu1 %v3467_v26 }
 0x79b   :  { %2594 = vmatpush1.bf16.msra.mxu1 %v3465_v28 }
 0x79c   :  { %2595 = vmatprep.subr.bf16.mxu1 %v3470_v30 }
 0x79f   :  { %2596 = vmatpush1.bf16.msra.mxu1 %v3468_v31 }
 0x7a0   :  { %2597 = vmatprep.subr.bf16.mxu1 %v3473_v32 }
 0x7a3   :  { %2598 = vmatpush1.bf16.msra.mxu1 %v3471_v33 }
 0x7a4   :  { %2599 = vmatprep.subr.bf16.mxu1 %v3476_v34 }
 0x7a7   :  { %2600 = vmatpush1.bf16.msra.mxu1 %v3474_v35 }
 0x7a8   :  { %2601 = vmatprep.subr.bf16.mxu1 %v3479_v36 }
 0x7ab   :  { %2602 = vmatpush1.bf16.msra.mxu1 %v3477_v37 }
 0x7ac   :  { %2603 = vmatprep.subr.bf16.mxu1 %v3482_v38 }
 0x7af   :  { %2604 = vmatpush1.bf16.msra.mxu1 %v3480_v39 }
 0x7b0   :  { %2605 = vmatprep.subr.bf16.mxu1 %v3485_v40 }
 0x7b3   :  { %2606 = vmatpush1.bf16.msra.mxu1 %v3483_v41 }
 0x7b4   :  { %2607 = vmatprep.subr.bf16.mxu1 %v3488_v42 }
 0x7b7   :  { %2608 = vmatpush1.bf16.msra.mxu1 %v3486_v43 }
 0x7b8   :  { %2609 = vmatprep.subr.bf16.mxu1 %v3491_v45 }
 0x7bb   :  { %2610 = vmatpush1.bf16.msra.mxu1 %v3489_v46 }
 0x7bc   :  { %2611 = vmatprep.subr.bf16.mxu1 %v3494_v48 }
 0x7bf   :  { %2612 = vmatpush1.bf16.msra.mxu1 %v3492_v51 }
 0x7c2   :  { %2614 = vmatmul.mubr.bf16.vlgmr.msra.gmra.mrb[20].mxu1 %v2142_v54 }
 0x7c3   :  { %3648 = shalt.err (!%p3645_p10)
}
 0x7c4   :  { %s3649_s19 = scalar_lea.hbm %s4052_s18, 128 }
 0x7c5   :  { %p3650_p11 = scmp.ne.s32.totalorder %s4052_s18, %s3649_s19  ;;  %p3653_p12 = scmp.lt.u32.totalorder %s3649_s19, %s4052_s18 }
 0x7c7   :  { %p3655_p13 = pnand %p3653_p12, %p3650_p11 }
 0x7c9   :  { %3658 = shalt.err (!%p3655_p13)
}
 0x7ca   :  { %2645 = dma.vmem_to_hbm [thread:$0]  %s2643_s3, 128, %s4052_s18, [#allocation4]   ;;  %v2208_v49 = vld [vmem:[%s4051_s17] sm:$0x3] }
 0x7cb   :  { %v2213_v27 = vrot.slane %v2208_v49, %v3915_v50  ;;  %v2217_v55 = vrot.slane %v2208_v49, %v3923_v52  ;;  %s3710_s17 = smov [#allocation14]  }
 0x7cc   :  { %s2652_s18 = sshll.u32 %s3710_s17, 4  ;;  %s2653_s18 = int_to_ptr.vmem [resolvable:$true] %s2652_s18 }
 0x7cd   :  { %s3659_s23 = scalar_lea.vmem %s2653_s18, 256  ;;  %p3664_p1 = scmp.lt.s32.totalorder %s2653_s18, %s2653_s18 }
 0x7ce   :  { %p3660_p0 = scmp.ne.s32.totalorder %s2653_s18, %s3659_s23  ;;  %p3665_p2 = scmp.lt.s32.totalorder %s3659_s23, %s3659_s23 }
 0x7d0   :  { %p3666_p3 = por %p3665_p2, %p3664_p1 }
 0x7d2   :  { %p3667_p4 = pnand %p3666_p3, %p3660_p0 }
 0x895   :  { %v2615_v56 = vpop.f32.mrb[20].mxu1 }
 0x896   :  { %v3033_v57 = vadd.f32 %v2615_v56, %v2213_v27  ;;  %v2617_v58 = vpop.f32.mrb[21].mxu1 }
 0x897   :  { %v3034_v59 = vadd.f32 %v2617_v58, %v2217_v55  ;;  %v2619_v60 = vpop.f32.mrb[22].mxu1 }
 0x898   :  { %v2970_v61 = vmul.f32 -1.442695, %v3033_v57  ;;  %v2620_v62 = vpop.f32.mrb[23].mxu1 }
 0x899   :  { %v2971_v63 = vmul.f32 -1.442695, %v3034_v59 }
 0x89a   :  { %3497 = vpow2.f32 %v2970_v61 }
 0x89b   :  { %3499 = vpow2.f32 %v2971_v63 }
 0x8a4   :  { %v3498_v0 = vpop.eup %3497 }
 0x8a5   :  { %v3500_v1 = vpop.eup %3499  ;;  %v2628_v2 = vadd.f32 1.0, %v3498_v0 }
 0x8a6   :  { %v2629_v3 = vadd.f32 1.0, %v3500_v1 }
 0x8a7   :  { %3501 = vrcp.f32 %v2628_v2 }
 0x8a8   :  { %3503 = vrcp.f32 %v2629_v3 }
 0x8b1   :  { %v3502_v50 = vpop.eup %3501 }
 0x8b2   :  { %v3504_v52 = vpop.eup %3503  ;;  %2634 = vst [vmem:[#allocation14] sm:$0xff] %v3502_v50 }
 0x8b3   :  { %2635 = vst [vmem:[#allocation14 + $0x8] sm:$0xff] %v3504_v52 }
 0x8b4   :  { %3670 = shalt.err (!%p3667_p4)
}
 0x8b5   :  { %s4070_s27 = sld [smem:[#allocation26_spill]] }
 0x8bb   :  { %s3671_s8 = scalar_lea.hbm %s4070_s27, 256 }
 0x8bc   :  { %p3672_p5 = scmp.ne.s32.totalorder %s4070_s27, %s3671_s8  ;;  %p3675_p6 = scmp.lt.u32.totalorder %s3671_s8, %s4070_s27 }
 0x8be   :  { %p3677_p7 = pnand %p3675_p6, %p3672_p5 }
 0x8c0   :  { %3680 = shalt.err (!%p3677_p7)
}
 0x8c1   :  { %2655 = dma.vmem_to_hbm [thread:$0]  %s2653_s18, 256, %s4070_s27, [#allocation15]  }
 0x8c2   :  { %3689 = dma.done.wait [#allocation4], 128  }
 0x8c3   :  { %3690 = vsyncadd [#allocation4], 4294967168 }
 0x8c4   :  { %3691 = dma.done.wait [#allocation15], 256  }
 0x8c5   :  { %3692 = vsyncadd [#allocation15], 4294967040 }
 0x8c6   :  { %2662 = vsyncpa [#allocation3], 1 }
 0x8c7   :  { %2663 = vsyncpa [#allocation6], 1 }
 0x8c8   :  { %2664 = vsyncpa [#allocation9], 1 }
 0x8c9   :  { %2665 = vsyncpa [#allocation12], 1 }
 0x8ca   :  { %2666 = vsyncpa [#allocation4], 1 }
 0x8cb   :  { %2667 = vsyncpa [#allocation15], 1 }

</bundles_post_ra>
